<compile_context>
chip_gen: v7x
topology: tpu7x:2x2x1
jax: 0.10.0
libtpu: 0.0.40
codegen_flags: <defaults>
</compile_context>

<pallas_src>
import jax
import jax.numpy as jnp
from jax.experimental import pallas as pl
from jax.experimental.pallas import tpu as pltpu


# ---------------------------------------------------------------------------
# Kernel
# ---------------------------------------------------------------------------
def clip_kernel(x_ref, wimg_ref, w1_ref, w2_ref, txtT_ref, o_ref, acc_ref):
    """Fused CLIP forward for one (batch-tile i, K-reduction step k) grid point.

    x_ref    : [tb, tk]          bf16  flattened-image tile (streamed)
    wimg_ref : [tk, DIN_P]       bf16  image-encoder weight tile (streamed)
    w1_ref   : [DIN_P, DIN_P]    bf16  projection head layer 1 (resident)
    w2_ref   : [DIN_P, DOUT_P]   bf16  projection head layer 2 (resident)
    txtT_ref : [DOUT_P, BT_P]    bf16  pre-transposed text features (resident)
    o_ref    : [tb, BT_P]        f32   logits tile = img_proj @ txt_feat.T
    acc_ref  : [tb, DIN_P]       f32   scratch accumulator for the K reduction
    """
    k = pl.program_id(1)

    # ---- image encoder stand-in: tiled matmul, f32 accumulation over K ----
    @pl.when(k == 0)
    def _init():
        acc_ref[...] = jnp.zeros_like(acc_ref)

    acc_ref[...] += jnp.dot(
        x_ref[...], wimg_ref[...], preferred_element_type=jnp.float32
    )

    # ---- finalize once per batch tile: projection head + logits ----
    @pl.when(k == pl.num_programs(1) - 1)
    def _finalize():
        img_feat = acc_ref[...]                                       # [tb, DIN_P] f32

        # Projection head: Linear -> ReLU -> Linear (bias-free, matches torch).
        # ReLU stays in f32 vregs; MXU inputs recast to bf16.
        h = jnp.maximum(
            jnp.dot(img_feat.astype(jnp.bfloat16), w1_ref[...],
                    preferred_element_type=jnp.float32),
            0.0,
        )
        img_proj = jnp.dot(h.astype(jnp.bfloat16), w2_ref[...],
                           preferred_element_type=jnp.float32)        # [tb, DOUT_P]

        # Contrastive logits: text features arrive pre-transposed, so this is a
        # plain NN matmul on the MXU (no in-kernel transpose).
        o_ref[...] = jnp.dot(img_proj.astype(jnp.bfloat16), txtT_ref[...],
                             preferred_element_type=jnp.float32)      # [tb, BT_P]


# ---------------------------------------------------------------------------
# Helpers
# ---------------------------------------------------------------------------
def _round_up(n, m):
    return ((n + m - 1) // m) * m


def _pad_axis(x, axis, target):
    pad = target - x.shape[axis]
    if pad == 0:
        return x
    widths = [(0, 0)] * x.ndim
    widths[axis] = (0, pad)
    return jnp.pad(x, widths)


def _vmem_limit_bytes():
    """Per-generation scoped-VMEM budget: ~96 MiB on 128-MiB parts, 48 MiB on v7x."""
    cap = None
    try:
        info = pltpu.get_tpu_info()
        for name in ("vmem_capacity_bytes", "vmem_bytes", "vmem_size_bytes"):
            val = getattr(info, name, None)
            if val:
                cap = int(val)
                break
    except Exception:
        cap = None
    if cap is None or cap <= 0:
        cap = 64 * 1024 * 1024  # conservative (v7x-class) default
    if cap <= 64 * 1024 * 1024:
        return 48 * 1024 * 1024
    return 96 * 1024 * 1024


# ---------------------------------------------------------------------------
# Wrapper
# ---------------------------------------------------------------------------
def clip_forward(image, input_ids, attention_mask, params, *, tb=256, tk=1024):
    """JAX wrapper mirroring CLIP.forward(image, input_ids, attention_mask)."""
    B, C, H, W = image.shape
    K = C * H * W
    B_txt, S = input_ids.shape
    D_in = params["w_img"].shape[1]
    D_out = params["w2"].shape[1]
    LANE = 128

    # bf16 MXU inputs (f32 accumulation happens in-kernel).
    x = image.reshape(B, K).astype(jnp.bfloat16)
    w_img = params["w_img"].astype(jnp.bfloat16)
    w1 = params["w1"].astype(jnp.bfloat16)
    w2 = params["w2"].astype(jnp.bfloat16)

    # ---- text encoder stand-in, hoisted out of the kernel ----
    # TODO(synk): embedding-table gather is data-dependent; it (and the tiny
    # mask-weighted mean) stay in plain JAX glue rather than the kernel.
    tok_emb = params["emb_table"][input_ids].astype(jnp.float32)       # [B_txt, S, Dout]
    mask_f = attention_mask.astype(jnp.float32)
    denom = jnp.maximum(mask_f.sum(-1, keepdims=True), 1.0)
    txt_feat = jnp.einsum("bs,bsd->bd", mask_f / denom, tok_emb)       # [B_txt, Dout] f32
    txt_featT = txt_feat.T.astype(jnp.bfloat16)                        # [Dout, B_txt]

    # ---- tile plan ----
    # Batch tiles: tb capped by the (sublane-rounded) batch.
    tb = max(8, min(_round_up(tb, 8), _round_up(B, 8)))
    B_pad = _round_up(B, tb)
    # v7x has 2 TensorCores: make sure the "parallel" batch axis has >= 2 tiles
    # whenever the batch is big enough.
    if B_pad // tb < 2 and B_pad >= 16:
        tb = max(8, (B_pad // 2) // 8 * 8)
        B_pad = _round_up(B, tb)

    # K tiles: prefer a tk that divides the lane-rounded K exactly, so the large
    # image operand does not need a wrapper-side jnp.pad copy (beyond lane rounding).
    K_lane = _round_up(K, LANE)
    tk = max(LANE, min((tk // LANE) * LANE, K_lane))
    if K_lane <= tk:
        tk = K_lane
    else:
        t = tk
        while t >= LANE and K_lane % t != 0:
            t -= LANE
        if t >= LANE:
            tk = t
    K_pad = _round_up(K_lane, tk)

    DIN_P = _round_up(D_in, LANE)
    DOUT_P = _round_up(D_out, LANE)
    BT_P = _round_up(B_txt, LANE)          # lane-dense logits output
    # TODO(synk): for very large contrastive batches, add a grid axis over BT_P
    # chunks (tiling txt_featT / out_spec) instead of keeping full BT_P resident.

    # Zero-padding preserves semantics (zero rows/cols contribute nothing; padded
    # output rows/cols are sliced off below).
    x_p = _pad_axis(_pad_axis(x, 1, K_pad), 0, B_pad)
    wimg_p = _pad_axis(_pad_axis(w_img, 0, K_pad), 1, DIN_P)
    w1_p = _pad_axis(_pad_axis(w1, 0, DIN_P), 1, DIN_P)
    w2_p = _pad_axis(_pad_axis(w2, 0, DIN_P), 1, DOUT_P)
    txtT_p = _pad_axis(_pad_axis(txt_featT, 0, DOUT_P), 1, BT_P)

    grid = (B_pad // tb, K_pad // tk)

    flops = 2 * B_pad * (
        K_pad * DIN_P          # image encoder matmul
        + DIN_P * DIN_P        # projection layer 1
        + DIN_P * DOUT_P       # projection layer 2
        + DOUT_P * BT_P        # contrastive logits
    )
    # w_img is re-streamed once per batch tile (grid[0] times).
    bytes_accessed = (
        int(x_p.size) * x_p.dtype.itemsize
        + grid[0] * int(wimg_p.size) * wimg_p.dtype.itemsize
        + int(w1_p.size) * w1_p.dtype.itemsize
        + int(w2_p.size) * w2_p.dtype.itemsize
        + int(txtT_p.size) * txtT_p.dtype.itemsize
        + B_pad * BT_P * 4
    )
    vmem_limit = _vmem_limit_bytes()

    def _resident_spec(shape, single_buffer):
        # Constant index_map -> block never changes; a single buffer suffices.
        if single_buffer:
            return pl.BlockSpec(shape, lambda i, k: (0, 0),
                                pipeline_mode=pl.Buffered(1))
        return pl.BlockSpec(shape, lambda i, k: (0, 0))

    def _call(single_buffer_residents):
        in_specs = [
            pl.BlockSpec((tb, tk), lambda i, k: (i, k)),          # x tile (streamed)
            pl.BlockSpec((tk, DIN_P), lambda i, k: (k, 0)),       # w_img tile (streamed)
            _resident_spec((DIN_P, DIN_P), single_buffer_residents),   # w1
            _resident_spec((DIN_P, DOUT_P), single_buffer_residents),  # w2
            _resident_spec((DOUT_P, BT_P), single_buffer_residents),   # txt_featT
        ]
        return pl.pallas_call(
            clip_kernel,
            out_shape=jax.ShapeDtypeStruct((B_pad, BT_P), jnp.float32),
            grid_spec=pltpu.PrefetchScalarGridSpec(
                num_scalar_prefetch=0,
                grid=grid,
                in_specs=in_specs,
                out_specs=pl.BlockSpec((tb, BT_P), lambda i, k: (i, 0)),
                scratch_shapes=[pltpu.VMEM((tb, DIN_P), jnp.float32)],
            ),
            compiler_params=pltpu.CompilerParams(
                dimension_semantics=("parallel", "arbitrary"),
                vmem_limit_bytes=vmem_limit,
            ),
            cost_estimate=pl.CostEstimate(
                flops=flops, transcendentals=0, bytes_accessed=bytes_accessed
            ),
        )(x_p, wimg_p, w1_p, w2_p, txtT_p)

    use_single_buffer = hasattr(pl, "Buffered")
    if use_single_buffer:
        try:
            logits_padded = _call(True)
        except Exception:
            # Some jax versions reject single-buffered residents; fall back.
            logits_padded = _call(False)
    else:
        logits_padded = _call(False)

    # Slice the padded logits back to the true (B, B_txt).
    return logits_padded[:B, :B_txt]


# ---------------------------------------------------------------------------
# Pure-JAX reference (same bf16-input / f32-accumulation numerics as the kernel)
# ---------------------------------------------------------------------------
def clip_reference(image, input_ids, attention_mask, params):
    B, C, H, W = image.shape
    x = image.reshape(B, C * H * W).astype(jnp.bfloat16)
    w_img = params["w_img"].astype(jnp.bfloat16)
    w1 = params["w1"].astype(jnp.bfloat16)
    w2 = params["w2"].astype(jnp.bfloat16)

    img_feat = jnp.dot(x, w_img, preferred_element_type=jnp.float32)
    h = jnp.maximum(
        jnp.dot(img_feat.astype(jnp.bfloat16), w1, preferred_element_type=jnp.float32),
        0.0,
    )
    img_proj = jnp.dot(h.astype(jnp.bfloat16), w2, preferred_element_type=jnp.float32)

    tok_emb = params["emb_table"][input_ids].astype(jnp.float32)
    mask_f = attention_mask.astype(jnp.float32)
    denom = jnp.maximum(mask_f.sum(-1, keepdims=True), 1.0)
    txt_feat = jnp.einsum("bs,bsd->bd", mask_f / denom, tok_emb)

    return jnp.dot(
        img_proj.astype(jnp.bfloat16),
        txt_feat.T.astype(jnp.bfloat16),
        preferred_element_type=jnp.float32,
    )


if __name__ == "__main__":
    # Small, deterministic shapes consistent with the forward pass.
    B, C, H, W = 2, 4, 16, 16      # images (NCHW)
    S = 8                          # sequence length
    VOCAB = 50
    D_IN = 32                      # mlp_in_dim (image-encoder feature size)
    D_OUT = 64                     # mlp_out_dim (scaled down from 768)

    key = jax.random.PRNGKey(0)
    k_img, k_ids, k_wimg, k_w1, k_w2, k_emb = jax.random.split(key, 6)

    image = jax.random.normal(k_img, (B, C, H, W), dtype=jnp.float32)
    input_ids = jax.random.randint(k_ids, (B, S), 0, VOCAB)
    attention_mask = jnp.array(
        [[1] * S, [1] * (S // 2) + [0] * (S // 2)], dtype=jnp.int32
    )

    params = {
        "w_img": jax.random.normal(k_wimg, (C * H * W, D_IN), jnp.float32) * 0.02,
        "w1": jax.random.normal(k_w1, (D_IN, D_IN), jnp.float32) * 0.05,
        "w2": jax.random.normal(k_w2, (D_IN, D_OUT), jnp.float32) * 0.05,
        "emb_table": jax.random.normal(k_emb, (VOCAB, D_OUT), jnp.float32) * 0.1,
    }

    logits = clip_forward(image, input_ids, attention_mask, params)
    jax.block_until_ready(logits)

    ref = clip_reference(image, input_ids, attention_mask, params)
    assert logits.shape == (B, B), logits.shape
    assert jnp.allclose(logits, ref, atol=2e-3, rtol=2e-2), (logits, ref)

    print("KERNEL_OK")
</pallas_src>

<mosaic_0001>
module attributes {stable_mosaic.version = 11 : i64} {
  func.func @clip_kernel(%arg0: i32, %arg1: i32, %arg2: memref<8x1024xbf16, #tpu.memory_space<vmem>>, %arg3: memref<1024x128xbf16, #tpu.memory_space<vmem>>, %arg4: memref<128x128xbf16, #tpu.memory_space<vmem>>, %arg5: memref<128x128xbf16, #tpu.memory_space<vmem>>, %arg6: memref<128x128xbf16, #tpu.memory_space<vmem>>, %arg7: memref<8x128xf32, #tpu.memory_space<vmem>>, %arg8: memref<8x128xf32, #tpu.memory_space<vmem>>) attributes {dimension_semantics = [#tpu.dimension_semantics<parallel>, #tpu.dimension_semantics<arbitrary>], iteration_bounds = array<i64: 1, 1>, scalar_prefetch = 0 : i64, scratch_operands = 1 : i64, tpu.core_type = #tpu.core_type<tc>, window_params = [{transform_indices = @transform_0, window_bounds = array<i64: 8, 1024>}, {transform_indices = @transform_1, window_bounds = array<i64: 1024, 128>}, {pipeline_mode = #tpu.pipeline_mode<synchronous>, transform_indices = @transform_2, window_bounds = array<i64: 128, 128>}, {pipeline_mode = #tpu.pipeline_mode<synchronous>, transform_indices = @transform_3, window_bounds = array<i64: 128, 128>}, {pipeline_mode = #tpu.pipeline_mode<synchronous>, transform_indices = @transform_4, window_bounds = array<i64: 128, 128>}, {transform_indices = @transform_5, window_bounds = array<i64: 8, 128>}]} {
    %c0_i32 = arith.constant 0 : i32
    %0 = arith.cmpi eq, %arg1, %c0_i32 : i32
    %1 = arith.extui %0 : i1 to i32
    %c0_i32_0 = arith.constant 0 : i32
    %2 = arith.cmpi ne, %1, %c0_i32_0 : i32
    scf.if %2 {
      %cst_10 = arith.constant 0.000000e+00 : f32
      %12 = vector.broadcast %cst_10 : f32 to vector<8x128xf32>
      %c0_11 = arith.constant 0 : index
      %c0_12 = arith.constant 0 : index
      %13 = vector.load %arg8[%c0_11, %c0_12] : memref<8x128xf32, #tpu.memory_space<vmem>>, vector<8x128xf32>
      tpu.vector_store %arg8[%c0_11, %c0_12], %12 {strides = array<i32>} : memref<8x128xf32, #tpu.memory_space<vmem>>, vector<8x128xf32>,
    } else {
    }
    %c0 = arith.constant 0 : index
    %c0_1 = arith.constant 0 : index
    %3 = vector.load %arg8[%c0, %c0_1] : memref<8x128xf32, #tpu.memory_space<vmem>>, vector<8x128xf32>
    %c0_2 = arith.constant 0 : index
    %c0_3 = arith.constant 0 : index
    %4 = vector.load %arg2[%c0_2, %c0_3] : memref<8x1024xbf16, #tpu.memory_space<vmem>>, vector<8x1024xbf16>
    %c0_4 = arith.constant 0 : index
    %c0_5 = arith.constant 0 : index
    %5 = vector.load %arg3[%c0_4, %c0_5] : memref<1024x128xbf16, #tpu.memory_space<vmem>>, vector<1024x128xbf16>
    %cst = arith.constant dense<0.000000e+00> : vector<8x128xf32>
    %6 = tpu.matmul %4, %5, %cst {dimension_numbers = #tpu.dot_dimension_numbers<[1], [0], [0], [1], [0, 0, 1, 1], [], []>} : vector<8x1024xbf16>, vector<1024x128xbf16>, vector<8x128xf32> -> vector<8x128xf32>
    %7 = arith.addf %3, %6 : vector<8x128xf32>
    %c0_6 = arith.constant 0 : index
    %c0_7 = arith.constant 0 : index
    %8 = vector.load %arg8[%c0_6, %c0_7] : memref<8x128xf32, #tpu.memory_space<vmem>>, vector<8x128xf32>
    tpu.vector_store %arg8[%c0_6, %c0_7], %7 {strides = array<i32>} : memref<8x128xf32, #tpu.memory_space<vmem>>, vector<8x128xf32>,
    %c0_i32_8 = arith.constant 0 : i32
    %9 = arith.cmpi eq, %arg1, %c0_i32_8 : i32
    %10 = arith.extui %9 : i1 to i32
    %c0_i32_9 = arith.constant 0 : i32
    %11 = arith.cmpi ne, %10, %c0_i32_9 : i32
    scf.if %11 {
      %c0_10 = arith.constant 0 : index
      %c0_11 = arith.constant 0 : index
      %12 = vector.load %arg8[%c0_10, %c0_11] : memref<8x128xf32, #tpu.memory_space<vmem>>, vector<8x128xf32>
      %13 = arith.truncf %12 : vector<8x128xf32> to vector<8x128xbf16>
      %c0_12 = arith.constant 0 : index
      %c0_13 = arith.constant 0 : index
      %14 = vector.load %arg4[%c0_12, %c0_13] : memref<128x128xbf16, #tpu.memory_space<vmem>>, vector<128x128xbf16>
      %cst_14 = arith.constant dense<0.000000e+00> : vector<8x128xf32>
      %15 = tpu.matmul %13, %14, %cst_14 {dimension_numbers = #tpu.dot_dimension_numbers<[1], [0], [0], [1], [0, 0, 1, 1], [], []>} : vector<8x128xbf16>, vector<128x128xbf16>, vector<8x128xf32> -> vector<8x128xf32>
      %cst_15 = arith.constant 0.000000e+00 : f32
      %16 = vector.broadcast %cst_15 : f32 to vector<8x128xf32>
      %17 = arith.maximumf %15, %16 : vector<8x128xf32>
      %18 = arith.truncf %17 : vector<8x128xf32> to vector<8x128xbf16>
      %c0_16 = arith.constant 0 : index
      %c0_17 = arith.constant 0 : index
      %19 = vector.load %arg5[%c0_16, %c0_17] : memref<128x128xbf16, #tpu.memory_space<vmem>>, vector<128x128xbf16>
      %cst_18 = arith.constant dense<0.000000e+00> : vector<8x128xf32>
      %20 = tpu.matmul %18, %19, %cst_18 {dimension_numbers = #tpu.dot_dimension_numbers<[1], [0], [0], [1], [0, 0, 1, 1], [], []>} : vector<8x128xbf16>, vector<128x128xbf16>, vector<8x128xf32> -> vector<8x128xf32>
      %21 = arith.truncf %20 : vector<8x128xf32> to vector<8x128xbf16>
      %c0_19 = arith.constant 0 : index
      %c0_20 = arith.constant 0 : index
      %22 = vector.load %arg6[%c0_19, %c0_20] : memref<128x128xbf16, #tpu.memory_space<vmem>>, vector<128x128xbf16>
      %cst_21 = arith.constant dense<0.000000e+00> : vector<8x128xf32>
      %23 = tpu.matmul %21, %22, %cst_21 {dimension_numbers = #tpu.dot_dimension_numbers<[1], [0], [0], [1], [0, 0, 1, 1], [], []>} : vector<8x128xbf16>, vector<128x128xbf16>, vector<8x128xf32> -> vector<8x128xf32>
      %c0_22 = arith.constant 0 : index
      %c0_23 = arith.constant 0 : index
      %24 = vector.load %arg7[%c0_22, %c0_23] : memref<8x128xf32, #tpu.memory_space<vmem>>, vector<8x128xf32>
      tpu.vector_store %arg7[%c0_22, %c0_23], %23 {strides = array<i32>} : memref<8x128xf32, #tpu.memory_space<vmem>>, vector<8x128xf32>,
    } else {
    }
    return
  }
  func.func @transform_0(%arg0: i32, %arg1: i32) -> (i32, i32) {
    %c0_i32 = arith.constant 0 : i32
    return %arg0, %arg1 : i32, i32
  }
  func.func @transform_1(%arg0: i32, %arg1: i32) -> (i32, i32) {
    %c0_i32 = arith.constant 0 : i32
    %c0_i32_0 = arith.constant 0 : i32
    return %arg1, %c0_i32 : i32, i32
  }
  func.func @transform_2(%arg0: i32, %arg1: i32) -> (i32, i32) {
    %c0_i32 = arith.constant 0 : i32
    %c0_i32_0 = arith.constant 0 : i32
    %c0_i32_1 = arith.constant 0 : i32
    return %c0_i32, %c0_i32_0 : i32, i32
  }
  func.func @transform_3(%arg0: i32, %arg1: i32) -> (i32, i32) {
    %c0_i32 = arith.constant 0 : i32
    %c0_i32_0 = arith.constant 0 : i32
    %c0_i32_1 = arith.constant 0 : i32
    return %c0_i32, %c0_i32_0 : i32, i32
  }
  func.func @transform_4(%arg0: i32, %arg1: i32) -> (i32, i32) {
    %c0_i32 = arith.constant 0 : i32
    %c0_i32_0 = arith.constant 0 : i32
    %c0_i32_1 = arith.constant 0 : i32
    return %c0_i32, %c0_i32_0 : i32, i32
  }
  func.func @transform_5(%arg0: i32, %arg1: i32) -> (i32, i32) {
    %c0_i32 = arith.constant 0 : i32
    %c0_i32_0 = arith.constant 0 : i32
    return %arg0, %c0_i32 : i32, i32
  }
}

module attributes {stable_mosaic.version = 11 : i64} {
  func.func @clip_kernel(%arg0: i32, %arg1: i32, %arg2: memref<8x1024xbf16, #tpu.memory_space<vmem>>, %arg3: memref<1024x128xbf16, #tpu.memory_space<vmem>>, %arg4: memref<128x128xbf16, #tpu.memory_space<vmem>>, %arg5: memref<128x128xbf16, #tpu.memory_space<vmem>>, %arg6: memref<128x128xbf16, #tpu.memory_space<vmem>>, %arg7: memref<8x128xf32, #tpu.memory_space<vmem>>, %arg8: memref<8x128xf32, #tpu.memory_space<vmem>>) attributes {dimension_semantics = [#tpu.dimension_semantics<parallel>, #tpu.dimension_semantics<arbitrary>], iteration_bounds = array<i64: 1, 1>, scalar_prefetch = 0 : i64, scratch_operands = 1 : i64, tpu.core_type = #tpu.core_type<tc>, window_params = [{transform_indices = @transform_0, window_bounds = array<i64: 8, 1024>}, {transform_indices = @transform_1, window_bounds = array<i64: 1024, 128>}, {pipeline_mode = #tpu.pipeline_mode<synchronous>, transform_indices = @transform_2, window_bounds = array<i64: 128, 128>}, {pipeline_mode = #tpu.pipeline_mode<synchronous>, transform_indices = @transform_3, window_bounds = array<i64: 128, 128>}, {pipeline_mode = #tpu.pipeline_mode<synchronous>, transform_indices = @transform_4, window_bounds = array<i64: 128, 128>}, {transform_indices = @transform_5, window_bounds = array<i64: 8, 128>}]} {
    %c0_i32 = arith.constant 0 : i32
    %0 = arith.cmpi eq, %arg1, %c0_i32 : i32
    %1 = arith.extui %0 : i1 to i32
    %c0_i32_0 = arith.constant 0 : i32
    %2 = arith.cmpi ne, %1, %c0_i32_0 : i32
    scf.if %2 {
      %cst_10 = arith.constant 0.000000e+00 : f32
      %12 = vector.broadcast %cst_10 : f32 to vector<8x128xf32>
      %c0_11 = arith.constant 0 : index
      %c0_12 = arith.constant 0 : index
      %13 = vector.load %arg8[%c0_11, %c0_12] : memref<8x128xf32, #tpu.memory_space<vmem>>, vector<8x128xf32>
      tpu.vector_store %arg8[%c0_11, %c0_12], %12 {strides = array<i32>} : memref<8x128xf32, #tpu.memory_space<vmem>>, vector<8x128xf32>,
    } else {
    }
    %c0 = arith.constant 0 : index
    %c0_1 = arith.constant 0 : index
    %3 = vector.load %arg8[%c0, %c0_1] : memref<8x128xf32, #tpu.memory_space<vmem>>, vector<8x128xf32>
    %c0_2 = arith.constant 0 : index
    %c0_3 = arith.constant 0 : index
    %4 = vector.load %arg2[%c0_2, %c0_3] : memref<8x1024xbf16, #tpu.memory_space<vmem>>, vector<8x1024xbf16>
    %c0_4 = arith.constant 0 : index
    %c0_5 = arith.constant 0 : index
    %5 = vector.load %arg3[%c0_4, %c0_5] : memref<1024x128xbf16, #tpu.memory_space<vmem>>, vector<1024x128xbf16>
    %cst = arith.constant dense<0.000000e+00> : vector<8x128xf32>
    %6 = tpu.matmul %4, %5, %cst {dimension_numbers = #tpu.dot_dimension_numbers<[1], [0], [0], [1], [0, 0, 1, 1], [], []>} : vector<8x1024xbf16>, vector<1024x128xbf16>, vector<8x128xf32> -> vector<8x128xf32>
    %7 = arith.addf %3, %6 : vector<8x128xf32>
    %c0_6 = arith.constant 0 : index
    %c0_7 = arith.constant 0 : index
    %8 = vector.load %arg8[%c0_6, %c0_7] : memref<8x128xf32, #tpu.memory_space<vmem>>, vector<8x128xf32>
    tpu.vector_store %arg8[%c0_6, %c0_7], %7 {strides = array<i32>} : memref<8x128xf32, #tpu.memory_space<vmem>>, vector<8x128xf32>,
    %c0_i32_8 = arith.constant 0 : i32
    %9 = arith.cmpi eq, %arg1, %c0_i32_8 : i32
    %10 = arith.extui %9 : i1 to i32
    %c0_i32_9 = arith.constant 0 : i32
    %11 = arith.cmpi ne, %10, %c0_i32_9 : i32
    scf.if %11 {
      %c0_10 = arith.constant 0 : index
      %c0_11 = arith.constant 0 : index
      %12 = vector.load %arg8[%c0_10, %c0_11] : memref<8x128xf32, #tpu.memory_space<vmem>>, vector<8x128xf32>
      %13 = arith.truncf %12 : vector<8x128xf32> to vector<8x128xbf16>
      %c0_12 = arith.constant 0 : index
      %c0_13 = arith.constant 0 : index
      %14 = vector.load %arg4[%c0_12, %c0_13] : memref<128x128xbf16, #tpu.memory_space<vmem>>, vector<128x128xbf16>
      %cst_14 = arith.constant dense<0.000000e+00> : vector<8x128xf32>
      %15 = tpu.matmul %13, %14, %cst_14 {dimension_numbers = #tpu.dot_dimension_numbers<[1], [0], [0], [1], [0, 0, 1, 1], [], []>} : vector<8x128xbf16>, vector<128x128xbf16>, vector<8x128xf32> -> vector<8x128xf32>
      %cst_15 = arith.constant 0.000000e+00 : f32
      %16 = vector.broadcast %cst_15 : f32 to vector<8x128xf32>
      %17 = arith.maximumf %15, %16 : vector<8x128xf32>
      %18 = arith.truncf %17 : vector<8x128xf32> to vector<8x128xbf16>
      %c0_16 = arith.constant 0 : index
      %c0_17 = arith.constant 0 : index
      %19 = vector.load %arg5[%c0_16, %c0_17] : memref<128x128xbf16, #tpu.memory_space<vmem>>, vector<128x128xbf16>
      %cst_18 = arith.constant dense<0.000000e+00> : vector<8x128xf32>
      %20 = tpu.matmul %18, %19, %cst_18 {dimension_numbers = #tpu.dot_dimension_numbers<[1], [0], [0], [1], [0, 0, 1, 1], [], []>} : vector<8x128xbf16>, vector<128x128xbf16>, vector<8x128xf32> -> vector<8x128xf32>
      %21 = arith.truncf %20 : vector<8x128xf32> to vector<8x128xbf16>
      %c0_19 = arith.constant 0 : index
      %c0_20 = arith.constant 0 : index
      %22 = vector.load %arg6[%c0_19, %c0_20] : memref<128x128xbf16, #tpu.memory_space<vmem>>, vector<128x128xbf16>
      %cst_21 = arith.constant dense<0.000000e+00> : vector<8x128xf32>
      %23 = tpu.matmul %21, %22, %cst_21 {dimension_numbers = #tpu.dot_dimension_numbers<[1], [0], [0], [1], [0, 0, 1, 1], [], []>} : vector<8x128xbf16>, vector<128x128xbf16>, vector<8x128xf32> -> vector<8x128xf32>
      %c0_22 = arith.constant 0 : index
      %c0_23 = arith.constant 0 : index
      %24 = vector.load %arg7[%c0_22, %c0_23] : memref<8x128xf32, #tpu.memory_space<vmem>>, vector<8x128xf32>
      tpu.vector_store %arg7[%c0_22, %c0_23], %23 {strides = array<i32>} : memref<8x128xf32, #tpu.memory_space<vmem>>, vector<8x128xf32>,
    } else {
    }
    return
  }
  func.func @transform_0(%arg0: i32, %arg1: i32) -> (i32, i32) {
    %c0_i32 = arith.constant 0 : i32
    return %arg0, %arg1 : i32, i32
  }
  func.func @transform_1(%arg0: i32, %arg1: i32) -> (i32, i32) {
    %c0_i32 = arith.constant 0 : i32
    %c0_i32_0 = arith.constant 0 : i32
    return %arg1, %c0_i32 : i32, i32
  }
  func.func @transform_2(%arg0: i32, %arg1: i32) -> (i32, i32) {
    %c0_i32 = arith.constant 0 : i32
    %c0_i32_0 = arith.constant 0 : i32
    %c0_i32_1 = arith.constant 0 : i32
    return %c0_i32, %c0_i32_0 : i32, i32
  }
  func.func @transform_3(%arg0: i32, %arg1: i32) -> (i32, i32) {
    %c0_i32 = arith.constant 0 : i32
    %c0_i32_0 = arith.constant 0 : i32
    %c0_i32_1 = arith.constant 0 : i32
    return %c0_i32, %c0_i32_0 : i32, i32
  }
  func.func @transform_4(%arg0: i32, %arg1: i32) -> (i32, i32) {
    %c0_i32 = arith.constant 0 : i32
    %c0_i32_0 = arith.constant 0 : i32
    %c0_i32_1 = arith.constant 0 : i32
    return %c0_i32, %c0_i32_0 : i32, i32
  }
  func.func @transform_5(%arg0: i32, %arg1: i32) -> (i32, i32) {
    %c0_i32 = arith.constant 0 : i32
    %c0_i32_0 = arith.constant 0 : i32
    return %arg0, %c0_i32 : i32, i32
  }
}

</mosaic_0001>

<bundles_post_ra>
// kernel: tpu_custom_call.1
= control target key start
LH: loop header
LB: loop body
LE: loop exit
PB: predicated region body
PF: predicated region fallthrough
CT: control target
= control target key end

     0   :  { %10 = vsyncpa [#allocation4], 0  ;;  %s1809_s0 = inlined_call_operand.hbm [shape: bf16[8,1024], index: 0, kind: input, shape index: {}]   ;;  %s1810_s1 = inlined_call_operand.hbm [shape: bf16[1024,128], index: 1, kind: input, shape index: {}]   ;;  %s1811_s2 = inlined_call_operand.hbm [shape: bf16[128,128], index: 2, kind: input, shape index: {}]   ;;  %s1812_s3 = inlined_call_operand.hbm [shape: bf16[128,128], index: 3, kind: input, shape index: {}]   ;;  %s1813_s4 = inlined_call_operand.hbm [shape: bf16[128,128], index: 4, kind: input, shape index: {}]   ;;  %s1814_s5 = inlined_call_operand.hbm [shape: f32[8,128], index: 5, kind: output, shape index: {}]  }
   0x1   :  { %11 = vsyncpa [#allocation7], 0 }
   0x2   :  { %12 = vsyncpa [#allocation10], 0 }
   0x3   :  { %13 = vsyncpa [#allocation5], 0  ;;  %s1655_s18 = smov [#allocation6]   ;;  %s1515_s22 = scalar_lea.hbm %s1810_s1, 8192 }
   0x4   :  { %s29_s19 = sshll.u32 %s1655_s18, 4  ;;  %p1516_p0 = scmp.ne.s32.totalorder %s1810_s1, %s1515_s22  ;;  %s30_s19 = int_to_ptr.vmem [resolvable:$true] %s29_s19 }
   0x5   :  { %p1519_p1 = scmp.lt.u32.totalorder %s1515_s22, %s1810_s1 }
   0x7   :  { %p1521_p2 = pnand %p1519_p1, %p1516_p0 }
   0x9   :  { %1524 = shalt.err (!%p1521_p2)
}
   0xa   :  { %s1525_s27 = scalar_lea.vmem %s30_s19, 8192  ;;  %p1530_p4 = scmp.lt.s32.totalorder %s30_s19, %s30_s19 }
   0xb   :  { %p1526_p3 = scmp.ne.s32.totalorder %s30_s19, %s1525_s27  ;;  %p1531_p5 = scmp.lt.s32.totalorder %s1525_s27, %s1525_s27 }
   0xd   :  { %p1532_p6 = por %p1531_p5, %p1530_p4 }
   0xf   :  { %p1533_p7 = pnand %p1532_p6, %p1526_p3 }
  0x11   :  { %1536 = shalt.err (!%p1533_p7)
}
  0x12   :  { %s1656_s28 = smov 64   ;;  %s1657_s29 = smov 4  }
  0x13   :  { %35 = dma.hbm_to_vmem [thread:$0]  %s1810_s1, 8192, %s30_s19, [#allocation7], %s1656_s28, %s1656_s28, %s1657_s29  }
  0x14   :  { %s1658_s7 = smov [#allocation9]   ;;  %s1659_s9 = smov [#allocation3]  }
  0x15   :  { %s53_s8 = sshll.u32 %s1658_s7, 4  ;;  %s20_s10 = sshll.u32 %s1659_s9, 4  ;;  %s54_s8 = int_to_ptr.vmem [resolvable:$true] %s53_s8  ;;  %s21_s10 = int_to_ptr.vmem [resolvable:$true] %s20_s10 }
  0x16   :  { %s1537_s13 = scalar_lea.hbm %s1812_s3, 1024 }
  0x17   :  { %p1538_p8 = scmp.ne.s32.totalorder %s1812_s3, %s1537_s13  ;;  %p1541_p9 = scmp.lt.u32.totalorder %s1537_s13, %s1812_s3 }
  0x19   :  { %p1543_p10 = pnand %p1541_p9, %p1538_p8 }
  0x1b   :  { %1546 = shalt.err (!%p1543_p10)
}
  0x1c   :  { %s1547_s1 = scalar_lea.vmem %s54_s8, 1024  ;;  %p1552_p12 = scmp.lt.s32.totalorder %s54_s8, %s54_s8 }
  0x1d   :  { %p1548_p11 = scmp.ne.s32.totalorder %s54_s8, %s1547_s1  ;;  %p1553_p13 = scmp.lt.s32.totalorder %s1547_s1, %s1547_s1 }
  0x1f   :  { %p1554_p0 = por %p1553_p13, %p1552_p12 }
  0x21   :  { %p1555_p1 = pnand %p1554_p0, %p1548_p11 }
  0x23   :  { %1558 = shalt.err (!%p1555_p1)
}
  0x24   :  { %59 = dma.hbm_to_vmem [thread:$0]  %s1812_s3, 1024, %s54_s8, [#allocation10], %s1656_s28, %s1656_s28, %s1657_s29  }
  0x25   :  { %s1559_s22 = scalar_lea.hbm %s1809_s0, 512 }
  0x26   :  { %p1560_p2 = scmp.ne.s32.totalorder %s1809_s0, %s1559_s22  ;;  %p1563_p3 = scmp.lt.u32.totalorder %s1559_s22, %s1809_s0 }
  0x28   :  { %p1565_p4 = pnand %p1563_p3, %p1560_p2 }
  0x2a   :  { %1568 = shalt.err (!%p1565_p4)
}
  0x2b   :  { %s1569_s27 = scalar_lea.vmem %s21_s10, 512  ;;  %p1574_p6 = scmp.lt.s32.totalorder %s21_s10, %s21_s10 }
  0x2c   :  { %p1570_p5 = scmp.ne.s32.totalorder %s21_s10, %s1569_s27  ;;  %p1575_p7 = scmp.lt.s32.totalorder %s1569_s27, %s1569_s27 }
  0x2e   :  { %p1576_p8 = por %p1575_p7, %p1574_p6 }
  0x30   :  { %p1577_p9 = pnand %p1576_p8, %p1570_p5 }
  0x32   :  { %1580 = shalt.err (!%p1577_p9)
}
  0x33   :  { %23 = dma.hbm_to_vmem [thread:$0]  %s1809_s0, 512, %s21_s10, [#allocation4]  }
  0x34   :  { %s1660_s6 = smov [#allocation8]   ;;  %s1661_s8 = smov [#allocation11]  }
  0x35   :  { %s41_s7 = sshll.u32 %s1660_s6, 4  ;;  %s65_s9 = sshll.u32 %s1661_s8, 4  ;;  %s42_s7 = int_to_ptr.vmem [resolvable:$true] %s41_s7  ;;  %s66_s9 = int_to_ptr.vmem [resolvable:$true] %s65_s9 }
  0x36   :  { %s1581_s13 = scalar_lea.hbm %s1811_s2, 1024 }
  0x37   :  { %p1582_p10 = scmp.ne.s32.totalorder %s1811_s2, %s1581_s13  ;;  %p1585_p11 = scmp.lt.u32.totalorder %s1581_s13, %s1811_s2 }
  0x39   :  { %p1587_p12 = pnand %p1585_p11, %p1582_p10 }
  0x3b   :  { %1590 = shalt.err (!%p1587_p12)
}
  0x3c   :  { %s1591_s0 = scalar_lea.vmem %s42_s7, 1024  ;;  %p1596_p0 = scmp.lt.s32.totalorder %s42_s7, %s42_s7 }
  0x3d   :  { %p1592_p13 = scmp.ne.s32.totalorder %s42_s7, %s1591_s0  ;;  %p1597_p1 = scmp.lt.s32.totalorder %s1591_s0, %s1591_s0 }
  0x3f   :  { %p1598_p2 = por %p1597_p1, %p1596_p0 }
  0x41   :  { %p1599_p3 = pnand %p1598_p2, %p1592_p13 }
  0x43   :  { %1602 = shalt.err (!%p1599_p3)
}
  0x44   :  { %47 = dma.hbm_to_vmem [thread:$0]  %s1811_s2, 1024, %s42_s7, [#allocation7], %s1656_s28, %s1656_s28, %s1657_s29  }
  0x45   :  { %s1603_s20 = scalar_lea.hbm %s1813_s4, 1024 }
  0x46   :  { %p1604_p4 = scmp.ne.s32.totalorder %s1813_s4, %s1603_s20  ;;  %p1607_p5 = scmp.lt.u32.totalorder %s1603_s20, %s1813_s4 }
  0x48   :  { %p1609_p6 = pnand %p1607_p5, %p1604_p4 }
  0x4a   :  { %1612 = shalt.err (!%p1609_p6)
}
  0x4b   :  { %s1613_s25 = scalar_lea.vmem %s66_s9, 1024  ;;  %p1618_p8 = scmp.lt.s32.totalorder %s66_s9, %s66_s9 }
  0x4c   :  { %p1614_p7 = scmp.ne.s32.totalorder %s66_s9, %s1613_s25  ;;  %p1619_p9 = scmp.lt.s32.totalorder %s1613_s25, %s1613_s25 }
  0x4e   :  { %p1620_p10 = por %p1619_p9, %p1618_p8 }
  0x50   :  { %p1621_p11 = pnand %p1620_p10, %p1614_p7 }
  0x52   :  { %1624 = shalt.err (!%p1621_p11)
}
  0x53   :  { %71 = dma.hbm_to_vmem [thread:$0]  %s1813_s4, 1024, %s66_s9, [#allocation10], %s1656_s28, %s1656_s28, %s1657_s29  }
  0x54   :  { %1647 = dma.done.wait [#allocation4], 512  }
  0x55   :  { %1648 = vsyncadd [#allocation4], 4294966784 }
  0x56   :  { %1649 = dma.done.wait [#allocation7], 9216  }
  0x57   :  { %1650 = vsyncadd [#allocation7], 4294958080 }
  0x58   :  { %1651 = dma.done.wait [#allocation10], 2048  }
  0x59   :  { %1652 = vsyncadd [#allocation10], 4294965248  ;;  %v1419_v0 = vld [vmem:[#allocation6 + $0x40] sm:$0xff]   ;;  %v1423_v4 = vld [vmem:[#allocation6 + $0x48] sm:$0xff]   ;;  %vm1663_vm0 = vmmov 0   ;;  %s1664_s4 = smov [#allocation12]  }
  0x5a   :  { %v1420_v1 = vld [vmem:[#allocation6 + $0xc0] sm:$0xff]   ;;  %1234 = vmatprep.subr.bf16.mxu0 %v1419_v0  ;;  %v1424_v5 = vld [vmem:[#allocation6 + $0xc8] sm:$0xff]   ;;  %v1427_v8 = vld [vmem:[#allocation6 + $0x50] sm:$0xff]   ;;  %s1127_s28 = sshll.u32 %s1664_s4, 4  ;;  %s1128_s28 = int_to_ptr.vmem [resolvable:$true] %s1127_s28 }
  0x5b   :  { %v1421_v2 = vld [vmem:[#allocation6] sm:$0xff]   ;;  %1256 = vmatprep.subr.bf16.mxu1 %v1420_v1  ;;  %v1425_v6 = vld [vmem:[#allocation6 + $0x8] sm:$0xff]   ;;  %v1428_v9 = vld [vmem:[#allocation6 + $0xd0] sm:$0xff]   ;;  %s1625_s29 = scalar_lea.vmem %s1128_s28, 128  ;;  %p1630_p13 = scmp.lt.s32.totalorder %s1128_s28, %s1128_s28 }
  0x5c   :  { %v1422_v3 = vld [vmem:[#allocation6 + $0x80] sm:$0xff]   ;;  %1235 = vmatpush3.bf16.msra.mxu0 %v1421_v2  ;;  %v1426_v7 = vld [vmem:[#allocation6 + $0x88] sm:$0xff]   ;;  %v1429_v10 = vld [vmem:[#allocation6 + $0x10] sm:$0xff]   ;;  %p1626_p12 = scmp.ne.s32.totalorder %s1128_s28, %s1625_s29  ;;  %p1631_p0 = scmp.lt.s32.totalorder %s1625_s29, %s1625_s29 }
  0x5d   :  { %1257 = vmatpush3.bf16.msra.mxu1 %v1422_v3  ;;  %1236 = vmatprep.subr.bf16.mxu0 %v1423_v4  ;;  %v1430_v11 = vld [vmem:[#allocation6 + $0x90] sm:$0xff]   ;;  %v1431_v12 = vld [vmem:[#allocation6 + $0x58] sm:$0xff]   ;;  %v1435_v16 = vld [vmem:[#allocation6 + $0x60] sm:$0xff]  }
  0x5e   :  { %1258 = vmatprep.subr.bf16.mxu1 %v1424_v5  ;;  %v1432_v13 = vld [vmem:[#allocation6 + $0xd8] sm:$0xff]   ;;  %v1436_v17 = vld [vmem:[#allocation6 + $0xe0] sm:$0xff]   ;;  %v1439_v20 = vld [vmem:[#allocation6 + $0x68] sm:$0xff]   ;;  %p1632_p1 = por %p1631_p0, %p1630_p13 }
  0x5f   :  { %v1433_v14 = vld [vmem:[#allocation6 + $0x18] sm:$0xff]   ;;  %v1437_v18 = vld [vmem:[#allocation6 + $0x20] sm:$0xff]   ;;  %v1440_v21 = vld [vmem:[#allocation6 + $0xe8] sm:$0xff]  }
  0x60   :  { %1237 = vmatpush3.bf16.msra.mxu0 %v1425_v6  ;;  %v1434_v15 = vld [vmem:[#allocation6 + $0x98] sm:$0xff]   ;;  %v1438_v19 = vld [vmem:[#allocation6 + $0xa0] sm:$0xff]   ;;  %v1441_v22 = vld [vmem:[#allocation6 + $0x28] sm:$0xff]   ;;  %p1633_p2 = pnand %p1632_p1, %p1626_p12 }
  0x61   :  { %1259 = vmatpush3.bf16.msra.mxu1 %v1426_v7  ;;  %1238 = vmatprep.subr.bf16.mxu0 %v1427_v8  ;;  %v1442_v23 = vld [vmem:[#allocation6 + $0xa8] sm:$0xff]   ;;  %v1443_v24 = vld [vmem:[#allocation6 + $0x70] sm:$0xff]   ;;  %v1447_v28 = vld [vmem:[#allocation6 + $0x78] sm:$0xff]  }
  0x62   :  { %1260 = vmatprep.subr.bf16.mxu1 %v1428_v9  ;;  %v1444_v25 = vld [vmem:[#allocation6 + $0xf0] sm:$0xff]   ;;  %v1448_v29 = vld [vmem:[#allocation6 + $0xf8] sm:$0xff]   ;;  %v94_v32 = vld [vmem:[#allocation3] sm:$0xff] }
  0x63   :  { %v1445_v26 = vld [vmem:[#allocation6 + $0x30] sm:$0xff]   ;;  %v1449_v30 = vld [vmem:[#allocation6 + $0x38] sm:$0xff]   ;;  %v95_v33 = vld [vmem:[#allocation3 + $0x8] sm:$0xff]  ;;  %v1138_v34 = vcombine.low %v94_v32, %v94_v32  ;;  %v1139_v35 = vcombine.high %v94_v32, %v94_v32 }
  0x64   :  { %1239 = vmatpush3.bf16.msra.mxu0 %v1429_v10  ;;  %v1446_v27 = vld [vmem:[#allocation6 + $0xb0] sm:$0xff]   ;;  %v1450_v31 = vld [vmem:[#allocation6 + $0xb8] sm:$0xff]   ;;  %v1140_v36 = vcombine.low %v95_v33, %v95_v33  ;;  %v1141_v37 = vcombine.high %v95_v33, %v95_v33  ;;  %v1455_v38 = vld [vmem:[#allocation6 + $0x140] sm:$0xff]  }
  0x65   :  { %1261 = vmatpush3.bf16.msra.mxu1 %v1430_v11  ;;  %1240 = vmatprep.subr.bf16.mxu0 %v1431_v12  ;;  %v1456_v39 = vld [vmem:[#allocation6 + $0x1c0] sm:$0xff]   ;;  %v1459_v42 = vld [vmem:[#allocation6 + $0x148] sm:$0xff]   ;;  %v1463_v46 = vld [vmem:[#allocation6 + $0x150] sm:$0xff]  }
  0x66   :  { %1262 = vmatprep.subr.bf16.mxu1 %v1432_v13  ;;  %670 = vmatprep.mubr.bf16.mxu0 %v1139_v35  ;;  %v1457_v40 = vld [vmem:[#allocation6 + $0x100] sm:$0xff]   ;;  %v1460_v43 = vld [vmem:[#allocation6 + $0x1c8] sm:$0xff]   ;;  %v1464_v47 = vld [vmem:[#allocation6 + $0x1d0] sm:$0xff]   ;;  %v1662_v13 = vmov 0.0  }
  0x67   :  { %710 = vmatprep.mubr.bf16.mxu1 %v1141_v37  ;;  %v1458_v41 = vld [vmem:[#allocation6 + $0x180] sm:$0xff]   ;;  %v1461_v44 = vld [vmem:[#allocation6 + $0x108] sm:$0xff]   ;;  %v1465_v48 = vld [vmem:[#allocation6 + $0x110] sm:$0xff]  }
  0x68   :  { %1241 = vmatpush3.bf16.msra.mxu0 %v1433_v14  ;;  %v1462_v45 = vld [vmem:[#allocation6 + $0x188] sm:$0xff]   ;;  %v1466_v49 = vld [vmem:[#allocation6 + $0x190] sm:$0xff]   ;;  %v1467_v50 = vld [vmem:[#allocation6 + $0x158] sm:$0xff]  }
  0x69   :  { %1263 = vmatpush3.bf16.msra.mxu1 %v1434_v15  ;;  %1242 = vmatprep.subr.bf16.mxu0 %v1435_v16  ;;  %v1468_v51 = vld [vmem:[#allocation6 + $0x1d8] sm:$0xff]   ;;  %v1471_v54 = vld [vmem:[#allocation6 + $0x160] sm:$0xff]   ;;  %v1475_v58 = vld [vmem:[#allocation6 + $0x168] sm:$0xff]  }
  0x6a   :  { %1264 = vmatprep.subr.bf16.mxu1 %v1436_v17  ;;  %v1469_v52 = vld [vmem:[#allocation6 + $0x118] sm:$0xff]   ;;  %v1472_v55 = vld [vmem:[#allocation6 + $0x1e0] sm:$0xff]   ;;  %v1476_v59 = vld [vmem:[#allocation6 + $0x1e8] sm:$0xff]  }
  0x6b   :  { %v1470_v53 = vld [vmem:[#allocation6 + $0x198] sm:$0xff]   ;;  %v1473_v56 = vld [vmem:[#allocation6 + $0x120] sm:$0xff]   ;;  %v1477_v60 = vld [vmem:[#allocation6 + $0x128] sm:$0xff]  }
  0x6c   :  { %1243 = vmatpush3.bf16.msra.mxu0 %v1437_v18  ;;  %v1474_v57 = vld [vmem:[#allocation6 + $0x1a0] sm:$0xff]   ;;  %v1478_v61 = vld [vmem:[#allocation6 + $0x1a8] sm:$0xff]   ;;  %v1479_v62 = vld [vmem:[#allocation6 + $0x170] sm:$0xff]  }
  0x6d   :  { %1265 = vmatpush3.bf16.msra.mxu1 %v1438_v19  ;;  %1244 = vmatprep.subr.bf16.mxu0 %v1439_v20  ;;  %v1480_v63 = vld [vmem:[#allocation6 + $0x1f0] sm:$0xff]   ;;  %v1483_v2 = vld [vmem:[#allocation6 + $0x178] sm:$0xff]   ;;  %v1491_v12 = vld [vmem:[#allocation8] sm:$0xff]  }
  0x6e   :  { %1266 = vmatprep.subr.bf16.mxu1 %v1440_v21  ;;  %v1481_v0 = vld [vmem:[#allocation6 + $0x130] sm:$0xff]   ;;  %v1484_v3 = vld [vmem:[#allocation6 + $0x1f8] sm:$0xff]   ;;  %v1492_v14 = vld [vmem:[#allocation8 + $0x8] sm:$0xff]  }
  0x6f   :  { %v1482_v1 = vld [vmem:[#allocation6 + $0x1b0] sm:$0xff]   ;;  %v1485_v4 = vld [vmem:[#allocation6 + $0x138] sm:$0xff]   ;;  %v1495_v17 = vld [vmem:[#allocation8 + $0x20] sm:$0xff]  }
  0x70   :  { %1245 = vmatpush3.bf16.msra.mxu0 %v1441_v22  ;;  %v1486_v5 = vld [vmem:[#allocation6 + $0x1b8] sm:$0xff]   ;;  %v96_v6 = vld [vmem:[#allocation3 + $0x10] sm:$0xff]  ;;  %v1496_v18 = vld [vmem:[#allocation8 + $0x28] sm:$0xff]  }
  0x71   :  { %1267 = vmatpush3.bf16.msra.mxu1 %v1442_v23  ;;  %1246 = vmatprep.subr.bf16.mxu0 %v1443_v24  ;;  %v1142_v7 = vcombine.low %v96_v6, %v96_v6  ;;  %v1143_v8 = vcombine.high %v96_v6, %v96_v6  ;;  %v97_v9 = vld [vmem:[#allocation3 + $0x18] sm:$0xff]  ;;  %v1493_v15 = vld [vmem:[#allocation8 + $0x10] sm:$0xff]   ;;  %v1499_v21 = vld [vmem:[#allocation9] sm:$0xff]  }
  0x72   :  { %1268 = vmatprep.subr.bf16.mxu1 %v1444_v25  ;;  %v1144_v10 = vcombine.low %v97_v9, %v97_v9  ;;  %v1145_v11 = vcombine.high %v97_v9, %v97_v9  ;;  %v1494_v16 = vld [vmem:[#allocation8 + $0x18] sm:$0xff]   ;;  %v1497_v19 = vld [vmem:[#allocation8 + $0x30] sm:$0xff]   ;;  %v1500_v22 = vld [vmem:[#allocation9 + $0x8] sm:$0xff]  }
  0x73   :  { %v1498_v20 = vld [vmem:[#allocation8 + $0x38] sm:$0xff]   ;;  %v1501_v23 = vld [vmem:[#allocation9 + $0x10] sm:$0xff]   ;;  %v1503_v25 = vld [vmem:[#allocation9 + $0x20] sm:$0xff]  }
  0x74   :  { %1247 = vmatpush3.bf16.msra.mxu0 %v1445_v26  ;;  %v1502_v24 = vld [vmem:[#allocation9 + $0x18] sm:$0xff]   ;;  %v1504_v26 = vld [vmem:[#allocation9 + $0x28] sm:$0xff]  }
  0x75   :  { %1269 = vmatpush3.bf16.msra.mxu1 %v1446_v27  ;;  %1248 = vmatprep.subr.bf16.mxu0 %v1447_v28  ;;  %v1505_v27 = vld [vmem:[#allocation9 + $0x30] sm:$0xff]  }
  0x76   :  { %1270 = vmatprep.subr.bf16.mxu1 %v1448_v29 }
  0x78   :  { %1249 = vmatpush3.bf16.msra.mxu0 %v1449_v30 }
  0x79   :  { %1271 = vmatpush3.bf16.msra.mxu1 %v1450_v31  ;;  %1278 = vmatprep.subr.bf16.mxu0 %v1455_v38 }
  0x7a   :  { %1300 = vmatprep.subr.bf16.mxu1 %v1456_v39 }
  0x7b   :  { %671 = vmatmul.mubr.bf16.vlgmr.msra.gmra.mrb[0].mxu0 %v1138_v34 }
  0x7c   :  { %711 = vmatmul.mubr.bf16.vlgmr.msra.gmra.mrb[0].mxu1 %v1140_v36  ;;  %1279 = vmatpush3.bf16.msra.mxu0 %v1457_v40 }
  0x7d   :  { %1301 = vmatpush3.bf16.msra.mxu1 %v1458_v41  ;;  %1280 = vmatprep.subr.bf16.mxu0 %v1459_v42 }
  0x7e   :  { %1302 = vmatprep.subr.bf16.mxu1 %v1460_v43  ;;  %750 = vmatprep.mubr.bf16.mxu0 %v1143_v8 }
  0x7f   :  { %790 = vmatprep.mubr.bf16.mxu1 %v1145_v11 }
  0x80   :  { %1281 = vmatpush3.bf16.msra.mxu0 %v1461_v44 }
  0x81   :  { %1303 = vmatpush3.bf16.msra.mxu1 %v1462_v45  ;;  %1282 = vmatprep.subr.bf16.mxu0 %v1463_v46 }
  0x82   :  { %1304 = vmatprep.subr.bf16.mxu1 %v1464_v47 }
  0x84   :  { %1283 = vmatpush3.bf16.msra.mxu0 %v1465_v48 }
  0x85   :  { %1305 = vmatpush3.bf16.msra.mxu1 %v1466_v49  ;;  %1284 = vmatprep.subr.bf16.mxu0 %v1467_v50 }
  0x86   :  { %1306 = vmatprep.subr.bf16.mxu1 %v1468_v51 }
  0x88   :  { %1285 = vmatpush3.bf16.msra.mxu0 %v1469_v52  ;;  %v1506_v52 = vld [vmem:[#allocation9 + $0x38] sm:$0xff]  }
  0x89   :  { %1307 = vmatpush3.bf16.msra.mxu1 %v1470_v53  ;;  %1286 = vmatprep.subr.bf16.mxu0 %v1471_v54  ;;  %v1507_v53 = vld [vmem:[#allocation11] sm:$0xff]   ;;  %v1508_v54 = vld [vmem:[#allocation11 + $0x8] sm:$0xff]  }
  0x8a   :  { %1308 = vmatprep.subr.bf16.mxu1 %v1472_v55  ;;  %v1509_v55 = vld [vmem:[#allocation11 + $0x10] sm:$0xff]  }
  0x8c   :  { %1287 = vmatpush3.bf16.msra.mxu0 %v1473_v56  ;;  %v1510_v56 = vld [vmem:[#allocation11 + $0x18] sm:$0xff]  }
  0x8d   :  { %1309 = vmatpush3.bf16.msra.mxu1 %v1474_v57  ;;  %1288 = vmatprep.subr.bf16.mxu0 %v1475_v58  ;;  %v1511_v57 = vld [vmem:[#allocation11 + $0x20] sm:$0xff]   ;;  %v1512_v58 = vld [vmem:[#allocation11 + $0x28] sm:$0xff]  }
  0x8e   :  { %1310 = vmatprep.subr.bf16.mxu1 %v1476_v59  ;;  %v1513_v59 = vld [vmem:[#allocation11 + $0x30] sm:$0xff]  }
  0x90   :  { %1289 = vmatpush3.bf16.msra.mxu0 %v1477_v60 }
  0x91   :  { %1311 = vmatpush3.bf16.msra.mxu1 %v1478_v61  ;;  %1290 = vmatprep.subr.bf16.mxu0 %v1479_v62 }
  0x92   :  { %1312 = vmatprep.subr.bf16.mxu1 %v1480_v63 }
  0x94   :  { %1291 = vmatpush3.bf16.msra.mxu0 %v1481_v0 }
  0x95   :  { %1313 = vmatpush3.bf16.msra.mxu1 %v1482_v1  ;;  %1292 = vmatprep.subr.bf16.mxu0 %v1483_v2  ;;  %v1514_v2 = vld [vmem:[#allocation11 + $0x38] sm:$0xff]  }
  0x96   :  { %1314 = vmatprep.subr.bf16.mxu1 %v1484_v3 }
  0x98   :  { %1293 = vmatpush3.bf16.msra.mxu0 %v1485_v4 }
  0x99   :  { %1315 = vmatpush3.bf16.msra.mxu1 %v1486_v5  ;;  %1349 = vmatprep.subr.bf16.mxu0 %v1662_v13 }
  0x9a   :  { %1369 = vmatprep.subr.bf16.mxu1 %v1662_v13 }
  0x9b   :  { %751 = vmatmul.mubr.bf16.vlgmr.msra.gmra.mrb[4].mxu0 %v1142_v7 }
  0x9c   :  { %791 = vmatmul.mubr.bf16.vlgmr.msra.gmra.mrb[4].mxu1 %v1144_v10  ;;  %1350 = vmatpush3.bf16.msra.mxu0 %v1491_v12 }
  0x9d   :  { %1351 = vmatprep.subr.bf16.mxu0 %v1662_v13  ;;  %1365 = vmatprep.mubr.msk.bf16.mxu0 %vm1663_vm0, %v1662_v13 }
  0x9e   :  { %1385 = vmatprep.mubr.msk.bf16.mxu1 %vm1663_vm0, %v1662_v13  ;;  %1370 = vmatpush3.bf16.msra.mxu1 %v1499_v21 }
  0x9f   :  { %1371 = vmatprep.subr.bf16.mxu1 %v1662_v13 }
  0xa0   :  { %1352 = vmatpush3.bf16.msra.mxu0 %v1492_v14 }
  0xa1   :  { %1353 = vmatprep.subr.bf16.mxu0 %v1662_v13 }
  0xa2   :  { %1372 = vmatpush3.bf16.msra.mxu1 %v1500_v22 }
  0xa3   :  { %1373 = vmatprep.subr.bf16.mxu1 %v1662_v13 }
  0xa4   :  { %1354 = vmatpush3.bf16.msra.mxu0 %v1493_v15 }
  0xa5   :  { %1355 = vmatprep.subr.bf16.mxu0 %v1662_v13 }
  0xa6   :  { %1374 = vmatpush3.bf16.msra.mxu1 %v1501_v23 }
  0xa7   :  { %1375 = vmatprep.subr.bf16.mxu1 %v1662_v13 }
  0xa8   :  { %1356 = vmatpush3.bf16.msra.mxu0 %v1494_v16 }
  0xa9   :  { %1357 = vmatprep.subr.bf16.mxu0 %v1662_v13 }
  0xaa   :  { %1376 = vmatpush3.bf16.msra.mxu1 %v1502_v24 }
  0xab   :  { %1377 = vmatprep.subr.bf16.mxu1 %v1662_v13 }
  0xac   :  { %1358 = vmatpush3.bf16.msra.mxu0 %v1495_v17 }
  0xad   :  { %1359 = vmatprep.subr.bf16.mxu0 %v1662_v13 }
  0xae   :  { %1378 = vmatpush3.bf16.msra.mxu1 %v1503_v25 }
  0xaf   :  { %1379 = vmatprep.subr.bf16.mxu1 %v1662_v13 }
  0xb0   :  { %1360 = vmatpush3.bf16.msra.mxu0 %v1496_v18 }
  0xb1   :  { %1361 = vmatprep.subr.bf16.mxu0 %v1662_v13 }
  0xb2   :  { %1380 = vmatpush3.bf16.msra.mxu1 %v1504_v26 }
  0xb3   :  { %1381 = vmatprep.subr.bf16.mxu1 %v1662_v13 }
  0xb4   :  { %1362 = vmatpush3.bf16.msra.mxu0 %v1497_v19 }
  0xb5   :  { %1363 = vmatprep.subr.bf16.mxu0 %v1662_v13 }
  0xb6   :  { %1382 = vmatpush3.bf16.msra.mxu1 %v1505_v27 }
  0xb7   :  { %1383 = vmatprep.subr.bf16.mxu1 %v1662_v13 }
  0xb8   :  { %1364 = vmatpush3.bf16.msra.mxu0 %v1498_v20 }
  0xb9   :  { %1389 = vmatprep.subr.bf16.mxu0 %v1662_v13 }
  0xba   :  { %1384 = vmatpush3.bf16.msra.mxu1 %v1506_v52 }
 0x14e   :  { %v1250_v28 = vpop.f32.mrb[0].mxu0 }
 0x14f   :  { %v1272_v29 = vpop.f32.mrb[0].mxu1  ;;  %v1251_v30 = vpop.f32.mrb[1].mxu0 }
 0x150   :  { %v1273_v31 = vpop.f32.mrb[1].mxu1  ;;  %v1252_v32 = vadd.f32 %v1251_v30, %v1250_v28  ;;  %v1253_v34 = vpop.f32.mrb[2].mxu0 }
 0x151   :  { %v1274_v33 = vadd.f32 %v1273_v31, %v1272_v29  ;;  %v1275_v35 = vpop.f32.mrb[2].mxu1  ;;  %v1254_v36 = vpop.f32.mrb[3].mxu0 }
 0x152   :  { %v1276_v37 = vpop.f32.mrb[3].mxu1 }
 0x153   :  { %v713_v38 = vadd.f32 %v1274_v33, %v1252_v32 }
 0x16e   :  { %v1294_v39 = vpop.f32.mrb[4].mxu0 }
 0x16f   :  { %v1316_v40 = vpop.f32.mrb[4].mxu1  ;;  %v1295_v41 = vpop.f32.mrb[5].mxu0 }
 0x170   :  { %v1317_v42 = vpop.f32.mrb[5].mxu1  ;;  %v1296_v43 = vadd.f32 %v1295_v41, %v1294_v39  ;;  %v1297_v45 = vpop.f32.mrb[6].mxu0 }
 0x171   :  { %v1318_v44 = vadd.f32 %v1317_v42, %v1316_v40  ;;  %v1319_v46 = vpop.f32.mrb[6].mxu1  ;;  %v1298_v47 = vpop.f32.mrb[7].mxu0 }
 0x172   :  { %v1320_v48 = vpop.f32.mrb[7].mxu1  ;;  %v753_v49 = vadd.f32 %v1296_v43, %v713_v38 }
 0x174   :  { %v793_v50 = vadd.f32 %v1318_v44, %v753_v49 }
 0x176   :  { %v804_v51 = vpack.c.bf16 %v793_v50, %v793_v50 }
 0x178   :  { %1366 = vmatmul.mubr.bf16.vlgmr.msra.gmra.mrb[8].mxu0 %v804_v51 }
 0x179   :  { %1405 = vmatprep.mubr.msk.bf16.mxu0 %vm1663_vm0, %v1662_v13  ;;  %1390 = vmatpush3.bf16.msra.mxu0 %v1507_v53 }
 0x17a   :  { %1391 = vmatprep.subr.bf16.mxu0 %v1662_v13 }
 0x17d   :  { %1392 = vmatpush3.bf16.msra.mxu0 %v1508_v54 }
 0x17e   :  { %1393 = vmatprep.subr.bf16.mxu0 %v1662_v13 }
 0x181   :  { %1394 = vmatpush3.bf16.msra.mxu0 %v1509_v55 }
 0x182   :  { %1395 = vmatprep.subr.bf16.mxu0 %v1662_v13 }
 0x185   :  { %1396 = vmatpush3.bf16.msra.mxu0 %v1510_v56 }
 0x186   :  { %1397 = vmatprep.subr.bf16.mxu0 %v1662_v13 }
 0x189   :  { %1398 = vmatpush3.bf16.msra.mxu0 %v1511_v57 }
 0x18a   :  { %1399 = vmatprep.subr.bf16.mxu0 %v1662_v13 }
 0x18d   :  { %1400 = vmatpush3.bf16.msra.mxu0 %v1512_v58 }
 0x18e   :  { %1401 = vmatprep.subr.bf16.mxu0 %v1662_v13 }
 0x191   :  { %1402 = vmatpush3.bf16.msra.mxu0 %v1513_v59 }
 0x192   :  { %1403 = vmatprep.subr.bf16.mxu0 %v1662_v13 }
 0x195   :  { %1404 = vmatpush3.bf16.msra.mxu0 %v1514_v2 }
 0x24b   :  { %v903_v60 = vpop.f32.mrb[8].mxu0 }
 0x24c   :  { %v909_v61 = vmax.f32 %v903_v60, 0.0  ;;  %v1367_v62 = vpop.f32.mrb[9].mxu0 }
 0x24d   :  { %v906_v63 = vpop.f32.mrb[10].mxu0 }
 0x24e   :  { %v910_v0 = vpack.c.bf16 %v909_v61, %v909_v61  ;;  %v1368_v1 = vpop.f32.mrb[11].mxu0 }
 0x250   :  { %1386 = vmatmul.mubr.bf16.vlgmr.msra.gmra.mrb[8].mxu1 %v910_v0 }
 0x323   :  { %v1009_v3 = vpop.f32.mrb[8].mxu1 }
 0x324   :  { %v1015_v4 = vpack.c.bf16 %v1009_v3, %v1009_v3  ;;  %v1387_v5 = vpop.f32.mrb[9].mxu1 }
 0x325   :  { %v1012_v6 = vpop.f32.mrb[10].mxu1 }
 0x326   :  { %v1388_v7 = vpop.f32.mrb[11].mxu1  ;;  %1406 = vmatmul.mubr.bf16.vlgmr.msra.gmra.mrb[12].mxu0 %v1015_v4 }
 0x3f9   :  { %v1114_v8 = vpop.f32.mrb[12].mxu0 }
 0x3fa   :  { %1120 = vst [vmem:[#allocation12] sm:$0xff] %v1114_v8  ;;  %v1407_v9 = vpop.f32.mrb[13].mxu0 }
 0x3fb   :  { %v1117_v10 = vpop.f32.mrb[14].mxu0 }
 0x3fc   :  { %1636 = shalt.err (!%p1633_p2)
}
 0x3fd   :  { %s1637_s30 = scalar_lea.hbm %s1814_s5, 128 }
 0x3fe   :  { %p1638_p3 = scmp.ne.s32.totalorder %s1814_s5, %s1637_s30  ;;  %p1641_p4 = scmp.lt.u32.totalorder %s1637_s30, %s1814_s5 }
 0x400   :  { %p1643_p5 = pnand %p1641_p4, %p1638_p3 }
 0x402   :  { %1646 = shalt.err (!%p1643_p5)
}
 0x403   :  { %1130 = dma.vmem_to_hbm [thread:$0]  %s1128_s28, 128, %s1814_s5, [#allocation5]   ;;  %v1408_v11 = vpop.f32.mrb[15].mxu0 }
 0x404   :  { %1653 = dma.done.wait [#allocation5], 128  }
 0x405   :  { %1654 = vsyncadd [#allocation5], 4294967168 }
 0x406   :  { %1134 = vsyncpa [#allocation4], 1 }
 0x407   :  { %1135 = vsyncpa [#allocation7], 1 }
 0x408   :  { %1136 = vsyncpa [#allocation10], 1 }
 0x409   :  { %1137 = vsyncpa [#allocation5], 1 }

// kernel: tpu_custom_call.1
= control target key start
LH: loop header
LB: loop body
LE: loop exit
PB: predicated region body
PF: predicated region fallthrough
CT: control target
= control target key end

     0   :  { %10 = vsyncpa [#allocation4], 0  ;;  %s1809_s0 = inlined_call_operand.hbm [shape: bf16[8,1024], index: 0, kind: input, shape index: {}]   ;;  %s1810_s1 = inlined_call_operand.hbm [shape: bf16[1024,128], index: 1, kind: input, shape index: {}]   ;;  %s1811_s2 = inlined_call_operand.hbm [shape: bf16[128,128], index: 2, kind: input, shape index: {}]   ;;  %s1812_s3 = inlined_call_operand.hbm [shape: bf16[128,128], index: 3, kind: input, shape index: {}]   ;;  %s1813_s4 = inlined_call_operand.hbm [shape: bf16[128,128], index: 4, kind: input, shape index: {}]   ;;  %s1814_s5 = inlined_call_operand.hbm [shape: f32[8,128], index: 5, kind: output, shape index: {}]  }
   0x1   :  { %11 = vsyncpa [#allocation7], 0 }
   0x2   :  { %12 = vsyncpa [#allocation10], 0 }
   0x3   :  { %13 = vsyncpa [#allocation5], 0  ;;  %s1655_s18 = smov [#allocation6]   ;;  %s1515_s22 = scalar_lea.hbm %s1810_s1, 8192 }
   0x4   :  { %s29_s19 = sshll.u32 %s1655_s18, 4  ;;  %p1516_p0 = scmp.ne.s32.totalorder %s1810_s1, %s1515_s22  ;;  %s30_s19 = int_to_ptr.vmem [resolvable:$true] %s29_s19 }
   0x5   :  { %p1519_p1 = scmp.lt.u32.totalorder %s1515_s22, %s1810_s1 }
   0x7   :  { %p1521_p2 = pnand %p1519_p1, %p1516_p0 }
   0x9   :  { %1524 = shalt.err (!%p1521_p2)
}
   0xa   :  { %s1525_s27 = scalar_lea.vmem %s30_s19, 8192  ;;  %p1530_p4 = scmp.lt.s32.totalorder %s30_s19, %s30_s19 }
   0xb   :  { %p1526_p3 = scmp.ne.s32.totalorder %s30_s19, %s1525_s27  ;;  %p1531_p5 = scmp.lt.s32.totalorder %s1525_s27, %s1525_s27 }
   0xd   :  { %p1532_p6 = por %p1531_p5, %p1530_p4 }
   0xf   :  { %p1533_p7 = pnand %p1532_p6, %p1526_p3 }
  0x11   :  { %1536 = shalt.err (!%p1533_p7)
}
  0x12   :  { %s1656_s28 = smov 64   ;;  %s1657_s29 = smov 4  }
  0x13   :  { %35 = dma.hbm_to_vmem [thread:$0]  %s1810_s1, 8192, %s30_s19, [#allocation7], %s1656_s28, %s1656_s28, %s1657_s29  }
  0x14   :  { %s1658_s7 = smov [#allocation9]   ;;  %s1659_s9 = smov [#allocation3]  }
  0x15   :  { %s53_s8 = sshll.u32 %s1658_s7, 4  ;;  %s20_s10 = sshll.u32 %s1659_s9, 4  ;;  %s54_s8 = int_to_ptr.vmem [resolvable:$true] %s53_s8  ;;  %s21_s10 = int_to_ptr.vmem [resolvable:$true] %s20_s10 }
  0x16   :  { %s1537_s13 = scalar_lea.hbm %s1812_s3, 1024 }
  0x17   :  { %p1538_p8 = scmp.ne.s32.totalorder %s1812_s3, %s1537_s13  ;;  %p1541_p9 = scmp.lt.u32.totalorder %s1537_s13, %s1812_s3 }
  0x19   :  { %p1543_p10 = pnand %p1541_p9, %p1538_p8 }
  0x1b   :  { %1546 = shalt.err (!%p1543_p10)
}
  0x1c   :  { %s1547_s1 = scalar_lea.vmem %s54_s8, 1024  ;;  %p1552_p12 = scmp.lt.s32.totalorder %s54_s8, %s54_s8 }
  0x1d   :  { %p1548_p11 = scmp.ne.s32.totalorder %s54_s8, %s1547_s1  ;;  %p1553_p13 = scmp.lt.s32.totalorder %s1547_s1, %s1547_s1 }
  0x1f   :  { %p1554_p0 = por %p1553_p13, %p1552_p12 }
  0x21   :  { %p1555_p1 = pnand %p1554_p0, %p1548_p11 }
  0x23   :  { %1558 = shalt.err (!%p1555_p1)
}
  0x24   :  { %59 = dma.hbm_to_vmem [thread:$0]  %s1812_s3, 1024, %s54_s8, [#allocation10], %s1656_s28, %s1656_s28, %s1657_s29  }
  0x25   :  { %s1559_s22 = scalar_lea.hbm %s1809_s0, 512 }
  0x26   :  { %p1560_p2 = scmp.ne.s32.totalorder %s1809_s0, %s1559_s22  ;;  %p1563_p3 = scmp.lt.u32.totalorder %s1559_s22, %s1809_s0 }
  0x28   :  { %p1565_p4 = pnand %p1563_p3, %p1560_p2 }
  0x2a   :  { %1568 = shalt.err (!%p1565_p4)
}
  0x2b   :  { %s1569_s27 = scalar_lea.vmem %s21_s10, 512  ;;  %p1574_p6 = scmp.lt.s32.totalorder %s21_s10, %s21_s10 }
  0x2c   :  { %p1570_p5 = scmp.ne.s32.totalorder %s21_s10, %s1569_s27  ;;  %p1575_p7 = scmp.lt.s32.totalorder %s1569_s27, %s1569_s27 }
  0x2e   :  { %p1576_p8 = por %p1575_p7, %p1574_p6 }
  0x30   :  { %p1577_p9 = pnand %p1576_p8, %p1570_p5 }
  0x32   :  { %1580 = shalt.err (!%p1577_p9)
}
  0x33   :  { %23 = dma.hbm_to_vmem [thread:$0]  %s1809_s0, 512, %s21_s10, [#allocation4]  }
  0x34   :  { %s1660_s6 = smov [#allocation8]   ;;  %s1661_s8 = smov [#allocation11]  }
  0x35   :  { %s41_s7 = sshll.u32 %s1660_s6, 4  ;;  %s65_s9 = sshll.u32 %s1661_s8, 4  ;;  %s42_s7 = int_to_ptr.vmem [resolvable:$true] %s41_s7  ;;  %s66_s9 = int_to_ptr.vmem [resolvable:$true] %s65_s9 }
  0x36   :  { %s1581_s13 = scalar_lea.hbm %s1811_s2, 1024 }
  0x37   :  { %p1582_p10 = scmp.ne.s32.totalorder %s1811_s2, %s1581_s13  ;;  %p1585_p11 = scmp.lt.u32.totalorder %s1581_s13, %s1811_s2 }
  0x39   :  { %p1587_p12 = pnand %p1585_p11, %p1582_p10 }
  0x3b   :  { %1590 = shalt.err (!%p1587_p12)
}
  0x3c   :  { %s1591_s0 = scalar_lea.vmem %s42_s7, 1024  ;;  %p1596_p0 = scmp.lt.s32.totalorder %s42_s7, %s42_s7 }
  0x3d   :  { %p1592_p13 = scmp.ne.s32.totalorder %s42_s7, %s1591_s0  ;;  %p1597_p1 = scmp.lt.s32.totalorder %s1591_s0, %s1591_s0 }
  0x3f   :  { %p1598_p2 = por %p1597_p1, %p1596_p0 }
  0x41   :  { %p1599_p3 = pnand %p1598_p2, %p1592_p13 }
  0x43   :  { %1602 = shalt.err (!%p1599_p3)
}
  0x44   :  { %47 = dma.hbm_to_vmem [thread:$0]  %s1811_s2, 1024, %s42_s7, [#allocation7], %s1656_s28, %s1656_s28, %s1657_s29  }
  0x45   :  { %s1603_s20 = scalar_lea.hbm %s1813_s4, 1024 }
  0x46   :  { %p1604_p4 = scmp.ne.s32.totalorder %s1813_s4, %s1603_s20  ;;  %p1607_p5 = scmp.lt.u32.totalorder %s1603_s20, %s1813_s4 }
  0x48   :  { %p1609_p6 = pnand %p1607_p5, %p1604_p4 }
  0x4a   :  { %1612 = shalt.err (!%p1609_p6)
}
  0x4b   :  { %s1613_s25 = scalar_lea.vmem %s66_s9, 1024  ;;  %p1618_p8 = scmp.lt.s32.totalorder %s66_s9, %s66_s9 }
  0x4c   :  { %p1614_p7 = scmp.ne.s32.totalorder %s66_s9, %s1613_s25  ;;  %p1619_p9 = scmp.lt.s32.totalorder %s1613_s25, %s1613_s25 }
  0x4e   :  { %p1620_p10 = por %p1619_p9, %p1618_p8 }
  0x50   :  { %p1621_p11 = pnand %p1620_p10, %p1614_p7 }
  0x52   :  { %1624 = shalt.err (!%p1621_p11)
}
  0x53   :  { %71 = dma.hbm_to_vmem [thread:$0]  %s1813_s4, 1024, %s66_s9, [#allocation10], %s1656_s28, %s1656_s28, %s1657_s29  }
  0x54   :  { %1647 = dma.done.wait [#allocation4], 512  }
  0x55   :  { %1648 = vsyncadd [#allocation4], 4294966784 }
  0x56   :  { %1649 = dma.done.wait [#allocation7], 9216  }
  0x57   :  { %1650 = vsyncadd [#allocation7], 4294958080 }
  0x58   :  { %1651 = dma.done.wait [#allocation10], 2048  }
  0x59   :  { %1652 = vsyncadd [#allocation10], 4294965248  ;;  %v1419_v0 = vld [vmem:[#allocation6 + $0x40] sm:$0xff]   ;;  %v1423_v4 = vld [vmem:[#allocation6 + $0x48] sm:$0xff]   ;;  %vm1663_vm0 = vmmov 0   ;;  %s1664_s4 = smov [#allocation12]  }
  0x5a   :  { %v1420_v1 = vld [vmem:[#allocation6 + $0xc0] sm:$0xff]   ;;  %1234 = vmatprep.subr.bf16.mxu0 %v1419_v0  ;;  %v1424_v5 = vld [vmem:[#allocation6 + $0xc8] sm:$0xff]   ;;  %v1427_v8 = vld [vmem:[#allocation6 + $0x50] sm:$0xff]   ;;  %s1127_s28 = sshll.u32 %s1664_s4, 4  ;;  %s1128_s28 = int_to_ptr.vmem [resolvable:$true] %s1127_s28 }
  0x5b   :  { %v1421_v2 = vld [vmem:[#allocation6] sm:$0xff]   ;;  %1256 = vmatprep.subr.bf16.mxu1 %v1420_v1  ;;  %v1425_v6 = vld [vmem:[#allocation6 + $0x8] sm:$0xff]   ;;  %v1428_v9 = vld [vmem:[#allocation6 + $0xd0] sm:$0xff]   ;;  %s1625_s29 = scalar_lea.vmem %s1128_s28, 128  ;;  %p1630_p13 = scmp.lt.s32.totalorder %s1128_s28, %s1128_s28 }
  0x5c   :  { %v1422_v3 = vld [vmem:[#allocation6 + $0x80] sm:$0xff]   ;;  %1235 = vmatpush3.bf16.msra.mxu0 %v1421_v2  ;;  %v1426_v7 = vld [vmem:[#allocation6 + $0x88] sm:$0xff]   ;;  %v1429_v10 = vld [vmem:[#allocation6 + $0x10] sm:$0xff]   ;;  %p1626_p12 = scmp.ne.s32.totalorder %s1128_s28, %s1625_s29  ;;  %p1631_p0 = scmp.lt.s32.totalorder %s1625_s29, %s1625_s29 }
  0x5d   :  { %1257 = vmatpush3.bf16.msra.mxu1 %v1422_v3  ;;  %1236 = vmatprep.subr.bf16.mxu0 %v1423_v4  ;;  %v1430_v11 = vld [vmem:[#allocation6 + $0x90] sm:$0xff]   ;;  %v1431_v12 = vld [vmem:[#allocation6 + $0x58] sm:$0xff]   ;;  %v1435_v16 = vld [vmem:[#allocation6 + $0x60] sm:$0xff]  }
  0x5e   :  { %1258 = vmatprep.subr.bf16.mxu1 %v1424_v5  ;;  %v1432_v13 = vld [vmem:[#allocation6 + $0xd8] sm:$0xff]   ;;  %v1436_v17 = vld [vmem:[#allocation6 + $0xe0] sm:$0xff]   ;;  %v1439_v20 = vld [vmem:[#allocation6 + $0x68] sm:$0xff]   ;;  %p1632_p1 = por %p1631_p0, %p1630_p13 }
  0x5f   :  { %v1433_v14 = vld [vmem:[#allocation6 + $0x18] sm:$0xff]   ;;  %v1437_v18 = vld [vmem:[#allocation6 + $0x20] sm:$0xff]   ;;  %v1440_v21 = vld [vmem:[#allocation6 + $0xe8] sm:$0xff]  }
  0x60   :  { %1237 = vmatpush3.bf16.msra.mxu0 %v1425_v6  ;;  %v1434_v15 = vld [vmem:[#allocation6 + $0x98] sm:$0xff]   ;;  %v1438_v19 = vld [vmem:[#allocation6 + $0xa0] sm:$0xff]   ;;  %v1441_v22 = vld [vmem:[#allocation6 + $0x28] sm:$0xff]   ;;  %p1633_p2 = pnand %p1632_p1, %p1626_p12 }
  0x61   :  { %1259 = vmatpush3.bf16.msra.mxu1 %v1426_v7  ;;  %1238 = vmatprep.subr.bf16.mxu0 %v1427_v8  ;;  %v1442_v23 = vld [vmem:[#allocation6 + $0xa8] sm:$0xff]   ;;  %v1443_v24 = vld [vmem:[#allocation6 + $0x70] sm:$0xff]   ;;  %v1447_v28 = vld [vmem:[#allocation6 + $0x78] sm:$0xff]  }
  0x62   :  { %1260 = vmatprep.subr.bf16.mxu1 %v1428_v9  ;;  %v1444_v25 = vld [vmem:[#allocation6 + $0xf0] sm:$0xff]   ;;  %v1448_v29 = vld [vmem:[#allocation6 + $0xf8] sm:$0xff]   ;;  %v94_v32 = vld [vmem:[#allocation3] sm:$0xff] }
  0x63   :  { %v1445_v26 = vld [vmem:[#allocation6 + $0x30] sm:$0xff]   ;;  %v1449_v30 = vld [vmem:[#allocation6 + $0x38] sm:$0xff]   ;;  %v95_v33 = vld [vmem:[#allocation3 + $0x8] sm:$0xff]  ;;  %v1138_v34 = vcombine.low %v94_v32, %v94_v32  ;;  %v1139_v35 = vcombine.high %v94_v32, %v94_v32 }
  0x64   :  { %1239 = vmatpush3.bf16.msra.mxu0 %v1429_v10  ;;  %v1446_v27 = vld [vmem:[#allocation6 + $0xb0] sm:$0xff]   ;;  %v1450_v31 = vld [vmem:[#allocation6 + $0xb8] sm:$0xff]   ;;  %v1140_v36 = vcombine.low %v95_v33, %v95_v33  ;;  %v1141_v37 = vcombine.high %v95_v33, %v95_v33  ;;  %v1455_v38 = vld [vmem:[#allocation6 + $0x140] sm:$0xff]  }
  0x65   :  { %1261 = vmatpush3.bf16.msra.mxu1 %v1430_v11  ;;  %1240 = vmatprep.subr.bf16.mxu0 %v1431_v12  ;;  %v1456_v39 = vld [vmem:[#allocation6 + $0x1c0] sm:$0xff]   ;;  %v1459_v42 = vld [vmem:[#allocation6 + $0x148] sm:$0xff]   ;;  %v1463_v46 = vld [vmem:[#allocation6 + $0x150] sm:$0xff]  }
  0x66   :  { %1262 = vmatprep.subr.bf16.mxu1 %v1432_v13  ;;  %670 = vmatprep.mubr.bf16.mxu0 %v1139_v35  ;;  %v1457_v40 = vld [vmem:[#allocation6 + $0x100] sm:$0xff]   ;;  %v1460_v43 = vld [vmem:[#allocation6 + $0x1c8] sm:$0xff]   ;;  %v1464_v47 = vld [vmem:[#allocation6 + $0x1d0] sm:$0xff]   ;;  %v1662_v13 = vmov 0.0  }
  0x67   :  { %710 = vmatprep.mubr.bf16.mxu1 %v1141_v37  ;;  %v1458_v41 = vld [vmem:[#allocation6 + $0x180] sm:$0xff]   ;;  %v1461_v44 = vld [vmem:[#allocation6 + $0x108] sm:$0xff]   ;;  %v1465_v48 = vld [vmem:[#allocation6 + $0x110] sm:$0xff]  }
  0x68   :  { %1241 = vmatpush3.bf16.msra.mxu0 %v1433_v14  ;;  %v1462_v45 = vld [vmem:[#allocation6 + $0x188] sm:$0xff]   ;;  %v1466_v49 = vld [vmem:[#allocation6 + $0x190] sm:$0xff]   ;;  %v1467_v50 = vld [vmem:[#allocation6 + $0x158] sm:$0xff]  }
  0x69   :  { %1263 = vmatpush3.bf16.msra.mxu1 %v1434_v15  ;;  %1242 = vmatprep.subr.bf16.mxu0 %v1435_v16  ;;  %v1468_v51 = vld [vmem:[#allocation6 + $0x1d8] sm:$0xff]   ;;  %v1471_v54 = vld [vmem:[#allocation6 + $0x160] sm:$0xff]   ;;  %v1475_v58 = vld [vmem:[#allocation6 + $0x168] sm:$0xff]  }
  0x6a   :  { %1264 = vmatprep.subr.bf16.mxu1 %v1436_v17  ;;  %v1469_v52 = vld [vmem:[#allocation6 + $0x118] sm:$0xff]   ;;  %v1472_v55 = vld [vmem:[#allocation6 + $0x1e0] sm:$0xff]   ;;  %v1476_v59 = vld [vmem:[#allocation6 + $0x1e8] sm:$0xff]  }
  0x6b   :  { %v1470_v53 = vld [vmem:[#allocation6 + $0x198] sm:$0xff]   ;;  %v1473_v56 = vld [vmem:[#allocation6 + $0x120] sm:$0xff]   ;;  %v1477_v60 = vld [vmem:[#allocation6 + $0x128] sm:$0xff]  }
  0x6c   :  { %1243 = vmatpush3.bf16.msra.mxu0 %v1437_v18  ;;  %v1474_v57 = vld [vmem:[#allocation6 + $0x1a0] sm:$0xff]   ;;  %v1478_v61 = vld [vmem:[#allocation6 + $0x1a8] sm:$0xff]   ;;  %v1479_v62 = vld [vmem:[#allocation6 + $0x170] sm:$0xff]  }
  0x6d   :  { %1265 = vmatpush3.bf16.msra.mxu1 %v1438_v19  ;;  %1244 = vmatprep.subr.bf16.mxu0 %v1439_v20  ;;  %v1480_v63 = vld [vmem:[#allocation6 + $0x1f0] sm:$0xff]   ;;  %v1483_v2 = vld [vmem:[#allocation6 + $0x178] sm:$0xff]   ;;  %v1491_v12 = vld [vmem:[#allocation8] sm:$0xff]  }
  0x6e   :  { %1266 = vmatprep.subr.bf16.mxu1 %v1440_v21  ;;  %v1481_v0 = vld [vmem:[#allocation6 + $0x130] sm:$0xff]   ;;  %v1484_v3 = vld [vmem:[#allocation6 + $0x1f8] sm:$0xff]   ;;  %v1492_v14 = vld [vmem:[#allocation8 + $0x8] sm:$0xff]  }
  0x6f   :  { %v1482_v1 = vld [vmem:[#allocation6 + $0x1b0] sm:$0xff]   ;;  %v1485_v4 = vld [vmem:[#allocation6 + $0x138] sm:$0xff]   ;;  %v1495_v17 = vld [vmem:[#allocation8 + $0x20] sm:$0xff]  }
  0x70   :  { %1245 = vmatpush3.bf16.msra.mxu0 %v1441_v22  ;;  %v1486_v5 = vld [vmem:[#allocation6 + $0x1b8] sm:$0xff]   ;;  %v96_v6 = vld [vmem:[#allocation3 + $0x10] sm:$0xff]  ;;  %v1496_v18 = vld [vmem:[#allocation8 + $0x28] sm:$0xff]  }
  0x71   :  { %1267 = vmatpush3.bf16.msra.mxu1 %v1442_v23  ;;  %1246 = vmatprep.subr.bf16.mxu0 %v1443_v24  ;;  %v1142_v7 = vcombine.low %v96_v6, %v96_v6  ;;  %v1143_v8 = vcombine.high %v96_v6, %v96_v6  ;;  %v97_v9 = vld [vmem:[#allocation3 + $0x18] sm:$0xff]  ;;  %v1493_v15 = vld [vmem:[#allocation8 + $0x10] sm:$0xff]   ;;  %v1499_v21 = vld [vmem:[#allocation9] sm:$0xff]  }
  0x72   :  { %1268 = vmatprep.subr.bf16.mxu1 %v1444_v25  ;;  %v1144_v10 = vcombine.low %v97_v9, %v97_v9  ;;  %v1145_v11 = vcombine.high %v97_v9, %v97_v9  ;;  %v1494_v16 = vld [vmem:[#allocation8 + $0x18] sm:$0xff]   ;;  %v1497_v19 = vld [vmem:[#allocation8 + $0x30] sm:$0xff]   ;;  %v1500_v22 = vld [vmem:[#allocation9 + $0x8] sm:$0xff]  }
  0x73   :  { %v1498_v20 = vld [vmem:[#allocation8 + $0x38] sm:$0xff]   ;;  %v1501_v23 = vld [vmem:[#allocation9 + $0x10] sm:$0xff]   ;;  %v1503_v25 = vld [vmem:[#allocation9 + $0x20] sm:$0xff]  }
  0x74   :  { %1247 = vmatpush3.bf16.msra.mxu0 %v1445_v26  ;;  %v1502_v24 = vld [vmem:[#allocation9 + $0x18] sm:$0xff]   ;;  %v1504_v26 = vld [vmem:[#allocation9 + $0x28] sm:$0xff]  }
  0x75   :  { %1269 = vmatpush3.bf16.msra.mxu1 %v1446_v27  ;;  %1248 = vmatprep.subr.bf16.mxu0 %v1447_v28  ;;  %v1505_v27 = vld [vmem:[#allocation9 + $0x30] sm:$0xff]  }
  0x76   :  { %1270 = vmatprep.subr.bf16.mxu1 %v1448_v29 }
  0x78   :  { %1249 = vmatpush3.bf16.msra.mxu0 %v1449_v30 }
  0x79   :  { %1271 = vmatpush3.bf16.msra.mxu1 %v1450_v31  ;;  %1278 = vmatprep.subr.bf16.mxu0 %v1455_v38 }
  0x7a   :  { %1300 = vmatprep.subr.bf16.mxu1 %v1456_v39 }
  0x7b   :  { %671 = vmatmul.mubr.bf16.vlgmr.msra.gmra.mrb[0].mxu0 %v1138_v34 }
  0x7c   :  { %711 = vmatmul.mubr.bf16.vlgmr.msra.gmra.mrb[0].mxu1 %v1140_v36  ;;  %1279 = vmatpush3.bf16.msra.mxu0 %v1457_v40 }
  0x7d   :  { %1301 = vmatpush3.bf16.msra.mxu1 %v1458_v41  ;;  %1280 = vmatprep.subr.bf16.mxu0 %v1459_v42 }
  0x7e   :  { %1302 = vmatprep.subr.bf16.mxu1 %v1460_v43  ;;  %750 = vmatprep.mubr.bf16.mxu0 %v1143_v8 }
  0x7f   :  { %790 = vmatprep.mubr.bf16.mxu1 %v1145_v11 }
  0x80   :  { %1281 = vmatpush3.bf16.msra.mxu0 %v1461_v44 }
  0x81   :  { %1303 = vmatpush3.bf16.msra.mxu1 %v1462_v45  ;;  %1282 = vmatprep.subr.bf16.mxu0 %v1463_v46 }
  0x82   :  { %1304 = vmatprep.subr.bf16.mxu1 %v1464_v47 }
  0x84   :  { %1283 = vmatpush3.bf16.msra.mxu0 %v1465_v48 }
  0x85   :  { %1305 = vmatpush3.bf16.msra.mxu1 %v1466_v49  ;;  %1284 = vmatprep.subr.bf16.mxu0 %v1467_v50 }
  0x86   :  { %1306 = vmatprep.subr.bf16.mxu1 %v1468_v51 }
  0x88   :  { %1285 = vmatpush3.bf16.msra.mxu0 %v1469_v52  ;;  %v1506_v52 = vld [vmem:[#allocation9 + $0x38] sm:$0xff]  }
  0x89   :  { %1307 = vmatpush3.bf16.msra.mxu1 %v1470_v53  ;;  %1286 = vmatprep.subr.bf16.mxu0 %v1471_v54  ;;  %v1507_v53 = vld [vmem:[#allocation11] sm:$0xff]   ;;  %v1508_v54 = vld [vmem:[#allocation11 + $0x8] sm:$0xff]  }
  0x8a   :  { %1308 = vmatprep.subr.bf16.mxu1 %v1472_v55  ;;  %v1509_v55 = vld [vmem:[#allocation11 + $0x10] sm:$0xff]  }
  0x8c   :  { %1287 = vmatpush3.bf16.msra.mxu0 %v1473_v56  ;;  %v1510_v56 = vld [vmem:[#allocation11 + $0x18] sm:$0xff]  }
  0x8d   :  { %1309 = vmatpush3.bf16.msra.mxu1 %v1474_v57  ;;  %1288 = vmatprep.subr.bf16.mxu0 %v1475_v58  ;;  %v1511_v57 = vld [vmem:[#allocation11 + $0x20] sm:$0xff]   ;;  %v1512_v58 = vld [vmem:[#allocation11 + $0x28] sm:$0xff]  }
  0x8e   :  { %1310 = vmatprep.subr.bf16.mxu1 %v1476_v59  ;;  %v1513_v59 = vld [vmem:[#allocation11 + $0x30] sm:$0xff]  }
  0x90   :  { %1289 = vmatpush3.bf16.msra.mxu0 %v1477_v60 }
  0x91   :  { %1311 = vmatpush3.bf16.msra.mxu1 %v1478_v61  ;;  %1290 = vmatprep.subr.bf16.mxu0 %v1479_v62 }
  0x92   :  { %1312 = vmatprep.subr.bf16.mxu1 %v1480_v63 }
  0x94   :  { %1291 = vmatpush3.bf16.msra.mxu0 %v1481_v0 }
  0x95   :  { %1313 = vmatpush3.bf16.msra.mxu1 %v1482_v1  ;;  %1292 = vmatprep.subr.bf16.mxu0 %v1483_v2  ;;  %v1514_v2 = vld [vmem:[#allocation11 + $0x38] sm:$0xff]  }
  0x96   :  { %1314 = vmatprep.subr.bf16.mxu1 %v1484_v3 }
  0x98   :  { %1293 = vmatpush3.bf16.msra.mxu0 %v1485_v4 }
  0x99   :  { %1315 = vmatpush3.bf16.msra.mxu1 %v1486_v5  ;;  %1349 = vmatprep.subr.bf16.mxu0 %v1662_v13 }
  0x9a   :  { %1369 = vmatprep.subr.bf16.mxu1 %v1662_v13 }
  0x9b   :  { %751 = vmatmul.mubr.bf16.vlgmr.msra.gmra.mrb[4].mxu0 %v1142_v7 }
  0x9c   :  { %791 = vmatmul.mubr.bf16.vlgmr.msra.gmra.mrb[4].mxu1 %v1144_v10  ;;  %1350 = vmatpush3.bf16.msra.mxu0 %v1491_v12 }
  0x9d   :  { %1351 = vmatprep.subr.bf16.mxu0 %v1662_v13  ;;  %1365 = vmatprep.mubr.msk.bf16.mxu0 %vm1663_vm0, %v1662_v13 }
  0x9e   :  { %1385 = vmatprep.mubr.msk.bf16.mxu1 %vm1663_vm0, %v1662_v13  ;;  %1370 = vmatpush3.bf16.msra.mxu1 %v1499_v21 }
  0x9f   :  { %1371 = vmatprep.subr.bf16.mxu1 %v1662_v13 }
  0xa0   :  { %1352 = vmatpush3.bf16.msra.mxu0 %v1492_v14 }
  0xa1   :  { %1353 = vmatprep.subr.bf16.mxu0 %v1662_v13 }
  0xa2   :  { %1372 = vmatpush3.bf16.msra.mxu1 %v1500_v22 }
  0xa3   :  { %1373 = vmatprep.subr.bf16.mxu1 %v1662_v13 }
  0xa4   :  { %1354 = vmatpush3.bf16.msra.mxu0 %v1493_v15 }
  0xa5   :  { %1355 = vmatprep.subr.bf16.mxu0 %v1662_v13 }
  0xa6   :  { %1374 = vmatpush3.bf16.msra.mxu1 %v1501_v23 }
  0xa7   :  { %1375 = vmatprep.subr.bf16.mxu1 %v1662_v13 }
  0xa8   :  { %1356 = vmatpush3.bf16.msra.mxu0 %v1494_v16 }
  0xa9   :  { %1357 = vmatprep.subr.bf16.mxu0 %v1662_v13 }
  0xaa   :  { %1376 = vmatpush3.bf16.msra.mxu1 %v1502_v24 }
  0xab   :  { %1377 = vmatprep.subr.bf16.mxu1 %v1662_v13 }
  0xac   :  { %1358 = vmatpush3.bf16.msra.mxu0 %v1495_v17 }
  0xad   :  { %1359 = vmatprep.subr.bf16.mxu0 %v1662_v13 }
  0xae   :  { %1378 = vmatpush3.bf16.msra.mxu1 %v1503_v25 }
  0xaf   :  { %1379 = vmatprep.subr.bf16.mxu1 %v1662_v13 }
  0xb0   :  { %1360 = vmatpush3.bf16.msra.mxu0 %v1496_v18 }
  0xb1   :  { %1361 = vmatprep.subr.bf16.mxu0 %v1662_v13 }
  0xb2   :  { %1380 = vmatpush3.bf16.msra.mxu1 %v1504_v26 }
  0xb3   :  { %1381 = vmatprep.subr.bf16.mxu1 %v1662_v13 }
  0xb4   :  { %1362 = vmatpush3.bf16.msra.mxu0 %v1497_v19 }
  0xb5   :  { %1363 = vmatprep.subr.bf16.mxu0 %v1662_v13 }
  0xb6   :  { %1382 = vmatpush3.bf16.msra.mxu1 %v1505_v27 }
  0xb7   :  { %1383 = vmatprep.subr.bf16.mxu1 %v1662_v13 }
  0xb8   :  { %1364 = vmatpush3.bf16.msra.mxu0 %v1498_v20 }
  0xb9   :  { %1389 = vmatprep.subr.bf16.mxu0 %v1662_v13 }
  0xba   :  { %1384 = vmatpush3.bf16.msra.mxu1 %v1506_v52 }
 0x14e   :  { %v1250_v28 = vpop.f32.mrb[0].mxu0 }
 0x14f   :  { %v1272_v29 = vpop.f32.mrb[0].mxu1  ;;  %v1251_v30 = vpop.f32.mrb[1].mxu0 }
 0x150   :  { %v1273_v31 = vpop.f32.mrb[1].mxu1  ;;  %v1252_v32 = vadd.f32 %v1251_v30, %v1250_v28  ;;  %v1253_v34 = vpop.f32.mrb[2].mxu0 }
 0x151   :  { %v1274_v33 = vadd.f32 %v1273_v31, %v1272_v29  ;;  %v1275_v35 = vpop.f32.mrb[2].mxu1  ;;  %v1254_v36 = vpop.f32.mrb[3].mxu0 }
 0x152   :  { %v1276_v37 = vpop.f32.mrb[3].mxu1 }
 0x153   :  { %v713_v38 = vadd.f32 %v1274_v33, %v1252_v32 }
 0x16e   :  { %v1294_v39 = vpop.f32.mrb[4].mxu0 }
 0x16f   :  { %v1316_v40 = vpop.f32.mrb[4].mxu1  ;;  %v1295_v41 = vpop.f32.mrb[5].mxu0 }
 0x170   :  { %v1317_v42 = vpop.f32.mrb[5].mxu1  ;;  %v1296_v43 = vadd.f32 %v1295_v41, %v1294_v39  ;;  %v1297_v45 = vpop.f32.mrb[6].mxu0 }
 0x171   :  { %v1318_v44 = vadd.f32 %v1317_v42, %v1316_v40  ;;  %v1319_v46 = vpop.f32.mrb[6].mxu1  ;;  %v1298_v47 = vpop.f32.mrb[7].mxu0 }
 0x172   :  { %v1320_v48 = vpop.f32.mrb[7].mxu1  ;;  %v753_v49 = vadd.f32 %v1296_v43, %v713_v38 }
 0x174   :  { %v793_v50 = vadd.f32 %v1318_v44, %v753_v49 }
 0x176   :  { %v804_v51 = vpack.c.bf16 %v793_v50, %v793_v50 }
 0x178   :  { %1366 = vmatmul.mubr.bf16.vlgmr.msra.gmra.mrb[8].mxu0 %v804_v51 }
 0x179   :  { %1405 = vmatprep.mubr.msk.bf16.mxu0 %vm1663_vm0, %v1662_v13  ;;  %1390 = vmatpush3.bf16.msra.mxu0 %v1507_v53 }
 0x17a   :  { %1391 = vmatprep.subr.bf16.mxu0 %v1662_v13 }
 0x17d   :  { %1392 = vmatpush3.bf16.msra.mxu0 %v1508_v54 }
 0x17e   :  { %1393 = vmatprep.subr.bf16.mxu0 %v1662_v13 }
 0x181   :  { %1394 = vmatpush3.bf16.msra.mxu0 %v1509_v55 }
 0x182   :  { %1395 = vmatprep.subr.bf16.mxu0 %v1662_v13 }
 0x185   :  { %1396 = vmatpush3.bf16.msra.mxu0 %v1510_v56 }
 0x186   :  { %1397 = vmatprep.subr.bf16.mxu0 %v1662_v13 }
 0x189   :  { %1398 = vmatpush3.bf16.msra.mxu0 %v1511_v57 }
 0x18a   :  { %1399 = vmatprep.subr.bf16.mxu0 %v1662_v13 }
 0x18d   :  { %1400 = vmatpush3.bf16.msra.mxu0 %v1512_v58 }
 0x18e   :  { %1401 = vmatprep.subr.bf16.mxu0 %v1662_v13 }
 0x191   :  { %1402 = vmatpush3.bf16.msra.mxu0 %v1513_v59 }
 0x192   :  { %1403 = vmatprep.subr.bf16.mxu0 %v1662_v13 }
 0x195   :  { %1404 = vmatpush3.bf16.msra.mxu0 %v1514_v2 }
 0x24b   :  { %v903_v60 = vpop.f32.mrb[8].mxu0 }
 0x24c   :  { %v909_v61 = vmax.f32 %v903_v60, 0.0  ;;  %v1367_v62 = vpop.f32.mrb[9].mxu0 }
 0x24d   :  { %v906_v63 = vpop.f32.mrb[10].mxu0 }
 0x24e   :  { %v910_v0 = vpack.c.bf16 %v909_v61, %v909_v61  ;;  %v1368_v1 = vpop.f32.mrb[11].mxu0 }
 0x250   :  { %1386 = vmatmul.mubr.bf16.vlgmr.msra.gmra.mrb[8].mxu1 %v910_v0 }
 0x323   :  { %v1009_v3 = vpop.f32.mrb[8].mxu1 }
 0x324   :  { %v1015_v4 = vpack.c.bf16 %v1009_v3, %v1009_v3  ;;  %v1387_v5 = vpop.f32.mrb[9].mxu1 }
 0x325   :  { %v1012_v6 = vpop.f32.mrb[10].mxu1 }
 0x326   :  { %v1388_v7 = vpop.f32.mrb[11].mxu1  ;;  %1406 = vmatmul.mubr.bf16.vlgmr.msra.gmra.mrb[12].mxu0 %v1015_v4 }
 0x3f9   :  { %v1114_v8 = vpop.f32.mrb[12].mxu0 }
 0x3fa   :  { %1120 = vst [vmem:[#allocation12] sm:$0xff] %v1114_v8  ;;  %v1407_v9 = vpop.f32.mrb[13].mxu0 }
 0x3fb   :  { %v1117_v10 = vpop.f32.mrb[14].mxu0 }
 0x3fc   :  { %1636 = shalt.err (!%p1633_p2)
}
 0x3fd   :  { %s1637_s30 = scalar_lea.hbm %s1814_s5, 128 }
 0x3fe   :  { %p1638_p3 = scmp.ne.s32.totalorder %s1814_s5, %s1637_s30  ;;  %p1641_p4 = scmp.lt.u32.totalorder %s1637_s30, %s1814_s5 }
 0x400   :  { %p1643_p5 = pnand %p1641_p4, %p1638_p3 }
 0x402   :  { %1646 = shalt.err (!%p1643_p5)
}
 0x403   :  { %1130 = dma.vmem_to_hbm [thread:$0]  %s1128_s28, 128, %s1814_s5, [#allocation5]   ;;  %v1408_v11 = vpop.f32.mrb[15].mxu0 }
 0x404   :  { %1653 = dma.done.wait [#allocation5], 128  }
 0x405   :  { %1654 = vsyncadd [#allocation5], 4294967168 }
 0x406   :  { %1134 = vsyncpa [#allocation4], 1 }
 0x407   :  { %1135 = vsyncpa [#allocation7], 1 }
 0x408   :  { %1136 = vsyncpa [#allocation10], 1 }
 0x409   :  { %1137 = vsyncpa [#allocation5], 1 }

</bundles_post_ra>
